<compile_context>
chip_gen: v7x
topology: tpu7x:2x2x1
jax: 0.10.0
libtpu: 0.0.40
codegen_flags: <defaults>
</compile_context>

<pallas_src>
import functools

import jax
import jax.numpy as jnp
from jax.experimental import pallas as pl
from jax.experimental.pallas import tpu as pltpu

_BN_EPS = 1e-5
_LEAKY_SLOPE = 0.01                       # PyTorch nn.LeakyReLU default
_VMEM_LIMIT_BYTES = 48 * 1024 * 1024      # explicit scoped-VMEM budget (headroom on v7x's 64 MiB)

# Current JAX exposes pltpu.CompilerParams; slightly older releases used TPUCompilerParams.
_CompilerParams = getattr(pltpu, "CompilerParams", None) or getattr(pltpu, "TPUCompilerParams")


def _norm_no_nan(x):
    """Row-normalize; all-zero rows map to 0 (== torch.nan_to_num(x / rowsum, 0) for
    non-negative adjacencies). Row reciprocal + broadcast-mul instead of a full divide."""
    s = jnp.sum(x, axis=-1, keepdims=True)
    inv = jnp.where(s == 0, jnp.float32(0.0), 1.0 / jnp.where(s == 0, jnp.float32(1.0), s))
    return x * inv


def _bn_leaky_relu(h, gamma, beta):
    """BatchNorm1d (training-mode batch stats, biased variance) + LeakyReLU.
    Per-feature scale/shift precomputed as (1,H) rows; LeakyReLU as max(y, 0.01*y)."""
    mean = jnp.mean(h, axis=0, keepdims=True)
    var = jnp.mean(jnp.square(h - mean), axis=0, keepdims=True)
    scale = gamma * jax.lax.rsqrt(var + jnp.float32(_BN_EPS))   # rsqrt -> EUP slot
    shift = beta - mean * scale
    y = h * scale + shift
    return jnp.maximum(y, jnp.float32(_LEAKY_SLOPE) * y)


# --------------------------------------------------------------------------- #
# Fused kernel: one grid step == one layer of GraphConvolution.forward
# --------------------------------------------------------------------------- #
def _fused_layers_kernel(drug0_ref, code0_ref, adj_dc_ref, adj_cc_ref,
                         w_c2d_ref, w_d_ref, w_d2c_ref, w_c_ref,
                         vec_d_ref, vec_c_ref,
                         drug_out_ref, code_out_ref,
                         drug_sc, code_sc, neigh_sc):
    layer = pl.program_id(0)
    nd = drug_sc.shape[0]
    lo = adj_dc_ref.dtype            # MXU operand dtype (bf16 in the perf path)

    @pl.when(layer == 0)
    def _():
        drug_sc[...] = drug0_ref[...].astype(jnp.float32)
        code_sc[...] = code0_ref[...].astype(jnp.float32)

    drug = drug_sc[...]
    code = code_sc[...]

    def dot(a, b):
        return jnp.dot(a, b, preferred_element_type=jnp.float32)

    # ---- drug path: c2d MyLinear + drug GraphConvBlock -----------------------
    code_d = dot(code.astype(lo), w_c2d_ref[...]) + vec_d_ref[0:1, :]
    drug_pre = drug + dot(adj_dc_ref[...], code_d.astype(lo))
    drug_h = dot(drug_pre.astype(lo), w_d_ref[...]) + vec_d_ref[1:2, :]
    drug_new = _bn_leaky_relu(drug_h, vec_d_ref[2:3, :], vec_d_ref[3:4, :])

    # ---- code path: d2c MyLinear + code GraphConvBlock ------------------------
    # Re-invoked at the last grid step == the PyTorch trailing d2c_linears[-1] /
    # code_blocks[-1] call (identical parameters, already resident in VMEM).
    def code_block(drug_in, code_in):
        drug_c = dot(drug_in.astype(lo), w_d2c_ref[...]) + vec_c_ref[0:1, :]
        # Merged aggregation: [code_drug_adj | norm(code_code_adj)] @ [drug_c ; code]
        # == adj_cd @ drug_c + w_cc @ code_in, as a single MXU contraction.
        neigh_sc[:nd, :] = drug_c.astype(lo)
        neigh_sc[nd:, :] = code_in.astype(lo)
        code_pre = code_in + dot(adj_cc_ref[...], neigh_sc[...])
        code_h = dot(code_pre.astype(lo), w_c_ref[...]) + vec_c_ref[1:2, :]
        return _bn_leaky_relu(code_h, vec_c_ref[2:3, :], vec_c_ref[3:4, :])

    code_new = code_block(drug, code)     # uses the OLD drug embeddings, as in the loop

    drug_sc[...] = drug_new
    code_sc[...] = code_new

    @pl.when(layer == pl.num_programs(0) - 1)
    def _():
        drug_out_ref[...] = drug_new.astype(drug_out_ref.dtype)
        code_out_ref[...] = code_block(drug_new, code_new).astype(code_out_ref.dtype)


# --------------------------------------------------------------------------- #
# Wrapper
# --------------------------------------------------------------------------- #
def graph_convolution_forward(drug_embeddings, code_embeddings,
                              drug_code_adj, code_code_adj, params,
                              mxu_dtype=jnp.bfloat16):
    """Mirrors GraphConvolution.forward. params mirror the module's layer lists:
      params["c2d"][l]         = (W, b)              # MyLinear c2d (W == torch weight.T)
      params["d2c"][l]         = (W, b)              # MyLinear d2c
      params["drug_blocks"][l] = (W, b, gamma, beta) # dense + BatchNorm1d
      params["code_blocks"][l] = (W, b, gamma, beta)
    """
    num_layers = len(params["drug_blocks"])
    nd, dd = drug_embeddings.shape
    nc, dc = code_embeddings.shape

    # __init__-time adjacency normalization + the once-per-forward
    # norm_no_nan(code_code_adj): all hoisted out of the kernel.
    adj_dc = _norm_no_nan(drug_code_adj.astype(jnp.float32))                 # (nd, nc)
    adj_cd = _norm_no_nan(jnp.transpose(drug_code_adj).astype(jnp.float32))  # (nc, nd)
    w_cc = _norm_no_nan(code_code_adj.astype(jnp.float32))                   # (nc, nc)
    adj_cc = jnp.concatenate([adj_cd, w_cc], axis=1)                         # (nc, nd+nc)

    def stack_w(layers):
        return jnp.stack([w for (w, *_rest) in layers]).astype(mxu_dtype)

    w_c2d = stack_w(params["c2d"])           # (L, dc, dd)
    w_d2c = stack_w(params["d2c"])           # (L, dd, dc)
    w_d = stack_w(params["drug_blocks"])     # (L, dd, hd)
    w_c = stack_w(params["code_blocks"])     # (L, dc, hc)
    hd, hc = w_d.shape[-1], w_c.shape[-1]

    # Pack the four 1-D params per block into one (L, 4, H) array per path.
    vec_d = jnp.stack([jnp.stack([bc, b, g, be]).astype(jnp.float32)
                       for (_, bc), (_, b, g, be)
                       in zip(params["c2d"], params["drug_blocks"])])
    vec_c = jnp.stack([jnp.stack([bd, b, g, be]).astype(jnp.float32)
                       for (_, bd), (_, b, g, be)
                       in zip(params["d2c"], params["code_blocks"])])

    # TODO(synk): the fused layers-on-the-grid kernel assumes uniform feature dims across
    # layers (which the module's trailing d2c/code_block reuse effectively requires);
    # heterogeneous hidden dims would need per-layer pallas_calls.
    assert hd == dd and hc == dc, "fused kernel expects uniform per-path feature dims"

    res = lambda l: (0, 0)            # VMEM-resident across all layers (DMA'd once)
    per_layer = lambda l: (l, 0, 0)   # this layer's slice of the stacked params

    fused = pl.pallas_call(
        _fused_layers_kernel,
        grid=(num_layers,),
        out_shape=(jax.ShapeDtypeStruct((nd, hd), jnp.float32),
                   jax.ShapeDtypeStruct((nc, hc), jnp.float32)),
        in_specs=[
            pl.BlockSpec((nd, dd), res),              # initial drug embeddings
            pl.BlockSpec((nc, dc), res),              # initial code embeddings
            pl.BlockSpec((nd, nc), res),              # normalized drug_code_adj
            pl.BlockSpec((nc, nd + nc), res),         # [code_drug_adj | norm(code_code_adj)]
            pl.BlockSpec((None, dc, dd), per_layer),  # c2d weights
            pl.BlockSpec((None, dd, hd), per_layer),  # drug dense weights
            pl.BlockSpec((None, dd, dc), per_layer),  # d2c weights
            pl.BlockSpec((None, dc, hc), per_layer),  # code dense weights
            pl.BlockSpec((None, 4, hd), per_layer),   # drug-path packed 1-D params
            pl.BlockSpec((None, 4, hc), per_layer),   # code-path packed 1-D params
        ],
        out_specs=(pl.BlockSpec((nd, hd), res),
                   pl.BlockSpec((nc, hc), res)),
        scratch_shapes=[
            pltpu.VMEM((nd, dd), jnp.float32),        # drug embedding carry
            pltpu.VMEM((nc, dc), jnp.float32),        # code embedding carry
            pltpu.VMEM((nd + nc, dc), mxu_dtype),     # merged-aggregation RHS [drug_c ; code]
        ],
        compiler_params=_CompilerParams(
            dimension_semantics=("arbitrary",),       # layers carry state -> serial
            vmem_limit_bytes=_VMEM_LIMIT_BYTES,
        ),
    )
    # TODO(synk): for graphs with thousands of nodes (esp. v7x's 64 MiB VMEM), add a
    # row-tiled variant (node-row grid axis marked "parallel" for the 2 TensorCores) that
    # streams adjacency row-blocks via BlockSpec instead of keeping them fully resident.
    return fused(drug_embeddings.astype(jnp.float32),
                 code_embeddings.astype(jnp.float32),
                 adj_dc.astype(mxu_dtype), adj_cc.astype(mxu_dtype),
                 w_c2d, w_d, w_d2c, w_c, vec_d, vec_c)


# --------------------------------------------------------------------------- #
# Pure-JAX reference (independent implementation of the PyTorch forward)
# --------------------------------------------------------------------------- #
def graph_convolution_ref(drug_emb, code_emb, drug_code_adj, code_code_adj, params,
                          mxu_dtype=jnp.float32):
    def mm(a, b):
        return jnp.dot(a.astype(mxu_dtype), b.astype(mxu_dtype),
                       preferred_element_type=jnp.float32)

    adj_dc = _norm_no_nan(drug_code_adj.astype(jnp.float32))
    adj_cd = _norm_no_nan(jnp.transpose(drug_code_adj).astype(jnp.float32))
    w_cc = _norm_no_nan(code_code_adj.astype(jnp.float32))

    def linear(x, wb):
        w, b = wb
        return mm(x, w) + b

    def block(emb, nb, adj, blk, code_adj=None):
        w, b, g, be = blk
        out = emb + mm(adj, nb)
        if code_adj is not None:
            out = out + mm(code_adj, emb)
        h = mm(out, w) + b
        mean = jnp.mean(h, axis=0, keepdims=True)
        var = jnp.mean((h - mean) ** 2, axis=0, keepdims=True)
        y = (h - mean) * jax.lax.rsqrt(var + _BN_EPS) * g + be
        return jnp.where(y >= 0, y, _LEAKY_SLOPE * y)

    for c2d, d2c, dblk, cblk in zip(params["c2d"], params["d2c"],
                                    params["drug_blocks"], params["code_blocks"]):
        code_d = linear(code_emb, c2d)
        drug_new = block(drug_emb, code_d, adj_dc, dblk)
        drug_c = linear(drug_emb, d2c)
        code_emb = block(code_emb, drug_c, adj_cd, cblk, code_adj=w_cc)
        drug_emb = drug_new
    drug_c = linear(drug_emb, params["d2c"][-1])
    code_emb = block(code_emb, drug_c, adj_cd, params["code_blocks"][-1], code_adj=w_cc)
    return drug_emb, code_emb


# --------------------------------------------------------------------------- #
if __name__ == "__main__":
    # Small graph; 128-wide feature dims keep every load/store lane-dense.
    num_layers = 2
    nd, nc = 16, 24                               # drug / code node counts
    drug_dim = code_dim = 128
    drug_hidden_dims = [drug_dim] * num_layers    # uniform dims (required by the module's
    code_hidden_dims = [code_dim] * num_layers    # trailing d2c/code_block reuse)

    key = jax.random.PRNGKey(0)
    k_emb_d, k_emb_c, k_adj_dc, k_adj_cc, k_par = jax.random.split(key, 5)

    drug_embeddings = jax.random.normal(k_emb_d, (nd, drug_dim), jnp.float32)
    code_embeddings = jax.random.normal(k_emb_c, (nc, code_dim), jnp.float32)
    drug_code_adj = (jax.random.uniform(k_adj_dc, (nd, nc)) < 0.3).astype(jnp.float32)
    code_code_adj = (jax.random.uniform(k_adj_cc, (nc, nc)) < 0.3).astype(jnp.float32)

    def xavier(k, fan_in, fan_out):
        bound = (6.0 / (fan_in + fan_out)) ** 0.5
        return jax.random.uniform(k, (fan_in, fan_out), jnp.float32, -bound, bound)

    def make_params(k):
        ks = iter(jax.random.split(k, 12 * num_layers))
        p = {"c2d": [], "d2c": [], "drug_blocks": [], "code_blocks": []}
        for _ in range(num_layers):
            p["c2d"].append((xavier(next(ks), code_dim, drug_dim),
                             0.1 * jax.random.normal(next(ks), (drug_dim,), jnp.float32)))
            p["d2c"].append((xavier(next(ks), drug_dim, code_dim),
                             0.1 * jax.random.normal(next(ks), (code_dim,), jnp.float32)))
            p["drug_blocks"].append((
                xavier(next(ks), drug_dim, drug_dim),
                0.1 * jax.random.normal(next(ks), (drug_dim,), jnp.float32),
                1.0 + 0.1 * jax.random.normal(next(ks), (drug_dim,), jnp.float32),   # BN gamma
                0.05 * jax.random.normal(next(ks), (drug_dim,), jnp.float32),        # BN beta
            ))
            p["code_blocks"].append((
                xavier(next(ks), code_dim, code_dim),
                0.1 * jax.random.normal(next(ks), (code_dim,), jnp.float32),
                1.0 + 0.1 * jax.random.normal(next(ks), (code_dim,), jnp.float32),
                0.05 * jax.random.normal(next(ks), (code_dim,), jnp.float32),
            ))
        return p

    params = make_params(k_par)

    def run(dt):
        fn = jax.jit(functools.partial(graph_convolution_forward, mxu_dtype=dt))
        return jax.block_until_ready(
            fn(drug_embeddings, code_embeddings, drug_code_adj, code_code_adj, params))

    # Perf path: bf16 MXU operands, f32 accumulation / epilogue.
    drug_bf16, code_bf16 = run(jnp.bfloat16)
    # Validation path: identical kernel with f32 MXU operands.
    drug_f32, code_f32 = run(jnp.float32)

    assert drug_bf16.shape == (nd, drug_hidden_dims[-1])
    assert code_bf16.shape == (nc, code_hidden_dims[-1])

    ref_drug_f32, ref_code_f32 = graph_convolution_ref(
        drug_embeddings, code_embeddings, drug_code_adj, code_code_adj, params,
        mxu_dtype=jnp.float32)
    ref_drug_bf16, ref_code_bf16 = graph_convolution_ref(
        drug_embeddings, code_embeddings, drug_code_adj, code_code_adj, params,
        mxu_dtype=jnp.bfloat16)

    # Tight check of kernel structure: f32-operand kernel vs f32 reference.
    assert jnp.allclose(drug_f32, ref_drug_f32, atol=1e-3, rtol=1e-3), "f32 drug mismatch"
    assert jnp.allclose(code_f32, ref_code_f32, atol=1e-3, rtol=1e-3), "f32 code mismatch"
    # Perf path vs matched-precision reference (same bf16 operand rounding, f32 accum).
    assert jnp.allclose(drug_bf16, ref_drug_bf16, atol=2e-3, rtol=2e-3), "bf16 drug mismatch"
    assert jnp.allclose(code_bf16, ref_code_bf16, atol=2e-3, rtol=2e-3), "bf16 code mismatch"

    print("KERNEL_OK")
</pallas_src>

<mosaic_0001>
module attributes {stable_mosaic.version = 11 : i64} {
  func.func @_fused_layers_kernel(%arg0: i32, %arg1: memref<16x128xf32, #tpu.memory_space<vmem>>, %arg2: memref<24x128xf32, #tpu.memory_space<vmem>>, %arg3: memref<16x24xbf16, #tpu.memory_space<vmem>>, %arg4: memref<24x40xbf16, #tpu.memory_space<vmem>>, %arg5: memref<1x128x128xbf16, #tpu.memory_space<vmem>>, %arg6: memref<1x128x128xbf16, #tpu.memory_space<vmem>>, %arg7: memref<1x128x128xbf16, #tpu.memory_space<vmem>>, %arg8: memref<1x128x128xbf16, #tpu.memory_space<vmem>>, %arg9: memref<1x4x128xf32, #tpu.memory_space<vmem>>, %arg10: memref<1x4x128xf32, #tpu.memory_space<vmem>>, %arg11: memref<16x128xf32, #tpu.memory_space<vmem>>, %arg12: memref<24x128xf32, #tpu.memory_space<vmem>>, %arg13: memref<16x128xf32, #tpu.memory_space<vmem>>, %arg14: memref<24x128xf32, #tpu.memory_space<vmem>>, %arg15: memref<40x128xbf16, #tpu.memory_space<vmem>>) attributes {dimension_semantics = [#tpu.dimension_semantics<arbitrary>], iteration_bounds = array<i64: 2>, scalar_prefetch = 0 : i64, scratch_operands = 3 : i64, tpu.core_type = #tpu.core_type<tc>, window_params = [{pipeline_mode = #tpu.pipeline_mode<synchronous>, transform_indices = @transform_0, window_bounds = array<i64: 16, 128>}, {pipeline_mode = #tpu.pipeline_mode<synchronous>, transform_indices = @transform_1, window_bounds = array<i64: 24, 128>}, {pipeline_mode = #tpu.pipeline_mode<synchronous>, transform_indices = @transform_2, window_bounds = array<i64: 16, 24>}, {pipeline_mode = #tpu.pipeline_mode<synchronous>, transform_indices = @transform_3, window_bounds = array<i64: 24, 40>}, {transform_indices = @transform_4, window_bounds = array<i64: 1, 128, 128>}, {transform_indices = @transform_5, window_bounds = array<i64: 1, 128, 128>}, {transform_indices = @transform_6, window_bounds = array<i64: 1, 128, 128>}, {transform_indices = @transform_7, window_bounds = array<i64: 1, 128, 128>}, {transform_indices = @transform_8, window_bounds = array<i64: 1, 4, 128>}, {transform_indices = @transform_9, window_bounds = array<i64: 1, 4, 128>}, {pipeline_mode = #tpu.pipeline_mode<synchronous>, transform_indices = @transform_10, window_bounds = array<i64: 16, 128>}, {pipeline_mode = #tpu.pipeline_mode<synchronous>, transform_indices = @transform_11, window_bounds = array<i64: 24, 128>}]} {
    %c0_i32 = arith.constant 0 : i32
    %0 = arith.cmpi eq, %arg0, %c0_i32 : i32
    %1 = arith.extui %0 : i1 to i32
    %c0_i32_0 = arith.constant 0 : i32
    %2 = arith.cmpi ne, %1, %c0_i32_0 : i32
    scf.if %2 {
      %c0_68 = arith.constant 0 : index
      %c0_69 = arith.constant 0 : index
      %110 = vector.load %arg1[%c0_68, %c0_69] : memref<16x128xf32, #tpu.memory_space<vmem>>, vector<16x128xf32>
      %c0_70 = arith.constant 0 : index
      %c0_71 = arith.constant 0 : index
      %111 = vector.load %arg13[%c0_70, %c0_71] : memref<16x128xf32, #tpu.memory_space<vmem>>, vector<16x128xf32>
      tpu.vector_store %arg13[%c0_70, %c0_71], %110 {strides = array<i32>} : memref<16x128xf32, #tpu.memory_space<vmem>>, vector<16x128xf32>,
      %c0_72 = arith.constant 0 : index
      %c0_73 = arith.constant 0 : index
      %112 = vector.load %arg2[%c0_72, %c0_73] : memref<24x128xf32, #tpu.memory_space<vmem>>, vector<24x128xf32>
      %c0_74 = arith.constant 0 : index
      %c0_75 = arith.constant 0 : index
      %113 = vector.load %arg14[%c0_74, %c0_75] : memref<24x128xf32, #tpu.memory_space<vmem>>, vector<24x128xf32>
      tpu.vector_store %arg14[%c0_74, %c0_75], %112 {strides = array<i32>} : memref<24x128xf32, #tpu.memory_space<vmem>>, vector<24x128xf32>,
    } else {
    }
    %c0 = arith.constant 0 : index
    %c0_1 = arith.constant 0 : index
    %3 = vector.load %arg13[%c0, %c0_1] : memref<16x128xf32, #tpu.memory_space<vmem>>, vector<16x128xf32>
    %c0_2 = arith.constant 0 : index
    %c0_3 = arith.constant 0 : index
    %4 = vector.load %arg14[%c0_2, %c0_3] : memref<24x128xf32, #tpu.memory_space<vmem>>, vector<24x128xf32>
    %5 = arith.truncf %4 : vector<24x128xf32> to vector<24x128xbf16>
    %c0_4 = arith.constant 0 : index
    %c0_5 = arith.constant 0 : index
    %c0_6 = arith.constant 0 : index
    %6 = vector.load %arg5[%c0_4, %c0_5, %c0_6] : memref<1x128x128xbf16, #tpu.memory_space<vmem>>, vector<1x128x128xbf16>
    %7 = vector.shape_cast %6 : vector<1x128x128xbf16> to vector<128x128xbf16>
    %cst = arith.constant dense<0.000000e+00> : vector<24x128xf32>
    %8 = tpu.matmul %5, %7, %cst {dimension_numbers = #tpu.dot_dimension_numbers<[1], [0], [0], [1], [0, 0, 1, 1], [], []>} : vector<24x128xbf16>, vector<128x128xbf16>, vector<24x128xf32> -> vector<24x128xf32>
    %c0_7 = arith.constant 0 : index
    %c0_8 = arith.constant 0 : index
    %c0_9 = arith.constant 0 : index
    %9 = vector.load %arg9[%c0_7, %c0_8, %c0_9] : memref<1x4x128xf32, #tpu.memory_space<vmem>>, vector<1x1x128xf32>
    %10 = vector.shape_cast %9 : vector<1x1x128xf32> to vector<1x128xf32>
    %11 = vector.broadcast %10 : vector<1x128xf32> to vector<24x128xf32>
    %12 = arith.addf %8, %11 : vector<24x128xf32>
    %c0_10 = arith.constant 0 : index
    %c0_11 = arith.constant 0 : index
    %13 = vector.load %arg3[%c0_10, %c0_11] : memref<16x24xbf16, #tpu.memory_space<vmem>>, vector<16x24xbf16>
    %14 = arith.truncf %12 : vector<24x128xf32> to vector<24x128xbf16>
    %cst_12 = arith.constant dense<0.000000e+00> : vector<16x128xf32>
    %15 = tpu.matmul %13, %14, %cst_12 {dimension_numbers = #tpu.dot_dimension_numbers<[1], [0], [0], [1], [0, 0, 1, 1], [], []>} : vector<16x24xbf16>, vector<24x128xbf16>, vector<16x128xf32> -> vector<16x128xf32>
    %16 = arith.addf %3, %15 : vector<16x128xf32>
    %17 = arith.truncf %16 : vector<16x128xf32> to vector<16x128xbf16>
    %c0_13 = arith.constant 0 : index
    %c0_14 = arith.constant 0 : index
    %c0_15 = arith.constant 0 : index
    %18 = vector.load %arg6[%c0_13, %c0_14, %c0_15] : memref<1x128x128xbf16, #tpu.memory_space<vmem>>, vector<1x128x128xbf16>
    %19 = vector.shape_cast %18 : vector<1x128x128xbf16> to vector<128x128xbf16>
    %cst_16 = arith.constant dense<0.000000e+00> : vector<16x128xf32>
    %20 = tpu.matmul %17, %19, %cst_16 {dimension_numbers = #tpu.dot_dimension_numbers<[1], [0], [0], [1], [0, 0, 1, 1], [], []>} : vector<16x128xbf16>, vector<128x128xbf16>, vector<16x128xf32> -> vector<16x128xf32>
    %c0_17 = arith.constant 0 : index
    %c1 = arith.constant 1 : index
    %c0_18 = arith.constant 0 : index
    %21 = vector.load %arg9[%c0_17, %c1, %c0_18] : memref<1x4x128xf32, #tpu.memory_space<vmem>>, vector<1x1x128xf32>
    %22 = vector.shape_cast %21 : vector<1x1x128xf32> to vector<1x128xf32>
    %23 = vector.broadcast %22 : vector<1x128xf32> to vector<16x128xf32>
    %24 = arith.addf %20, %23 : vector<16x128xf32>
    %c0_19 = arith.constant 0 : index
    %c2 = arith.constant 2 : index
    %c0_20 = arith.constant 0 : index
    %25 = vector.load %arg9[%c0_19, %c2, %c0_20] : memref<1x4x128xf32, #tpu.memory_space<vmem>>, vector<1x1x128xf32>
    %26 = vector.shape_cast %25 : vector<1x1x128xf32> to vector<1x128xf32>
    %c0_21 = arith.constant 0 : index
    %c3 = arith.constant 3 : index
    %c0_22 = arith.constant 0 : index
    %27 = vector.load %arg9[%c0_21, %c3, %c0_22] : memref<1x4x128xf32, #tpu.memory_space<vmem>>, vector<1x1x128xf32>
    %28 = vector.shape_cast %27 : vector<1x1x128xf32> to vector<1x128xf32>
    %cst_23 = arith.constant dense<0.000000e+00> : vector<128xf32>
    %29 = vector.multi_reduction <add>, %24, %cst_23 [0] : vector<16x128xf32> to vector<128xf32>
    %30 = vector.shape_cast %29 : vector<128xf32> to vector<1x128xf32>
    %cst_24 = arith.constant 1.600000e+01 : f32
    %31 = vector.broadcast %cst_24 : f32 to vector<1x128xf32>
    %32 = arith.divf %30, %31 : vector<1x128xf32>
    %33 = vector.broadcast %32 : vector<1x128xf32> to vector<16x128xf32>
    %34 = arith.subf %24, %33 : vector<16x128xf32>
    %35 = arith.mulf %34, %34 : vector<16x128xf32>
    %cst_25 = arith.constant dense<0.000000e+00> : vector<128xf32>
    %36 = vector.multi_reduction <add>, %35, %cst_25 [0] : vector<16x128xf32> to vector<128xf32>
    %37 = vector.shape_cast %36 : vector<128xf32> to vector<1x128xf32>
    %cst_26 = arith.constant 1.600000e+01 : f32
    %38 = vector.broadcast %cst_26 : f32 to vector<1x128xf32>
    %39 = arith.divf %37, %38 : vector<1x128xf32>
    %cst_27 = arith.constant 9.99999974E-6 : f32
    %40 = vector.broadcast %cst_27 : f32 to vector<1x128xf32>
    %41 = arith.addf %39, %40 : vector<1x128xf32>
    %42 = math.rsqrt %41 : vector<1x128xf32>
    %43 = arith.mulf %26, %42 : vector<1x128xf32>
    %44 = arith.mulf %32, %43 : vector<1x128xf32>
    %45 = arith.subf %28, %44 : vector<1x128xf32>
    %46 = vector.broadcast %43 : vector<1x128xf32> to vector<16x128xf32>
    %47 = arith.mulf %24, %46 : vector<16x128xf32>
    %48 = vector.broadcast %45 : vector<1x128xf32> to vector<16x128xf32>
    %49 = arith.addf %47, %48 : vector<16x128xf32>
    %cst_28 = arith.constant 0.00999999977 : f32
    %50 = vector.broadcast %cst_28 : f32 to vector<16x128xf32>
    %51 = arith.mulf %50, %49 : vector<16x128xf32>
    %52 = arith.maximumf %49, %51 : vector<16x128xf32>
    %53 = arith.truncf %3 : vector<16x128xf32> to vector<16x128xbf16>
    %c0_29 = arith.constant 0 : index
    %c0_30 = arith.constant 0 : index
    %c0_31 = arith.constant 0 : index
    %54 = vector.load %arg7[%c0_29, %c0_30, %c0_31] : memref<1x128x128xbf16, #tpu.memory_space<vmem>>, vector<1x128x128xbf16>
    %55 = vector.shape_cast %54 : vector<1x128x128xbf16> to vector<128x128xbf16>
    %cst_32 = arith.constant dense<0.000000e+00> : vector<16x128xf32>
    %56 = tpu.matmul %53, %55, %cst_32 {dimension_numbers = #tpu.dot_dimension_numbers<[1], [0], [0], [1], [0, 0, 1, 1], [], []>} : vector<16x128xbf16>, vector<128x128xbf16>, vector<16x128xf32> -> vector<16x128xf32>
    %c0_33 = arith.constant 0 : index
    %c0_34 = arith.constant 0 : index
    %c0_35 = arith.constant 0 : index
    %57 = vector.load %arg10[%c0_33, %c0_34, %c0_35] : memref<1x4x128xf32, #tpu.memory_space<vmem>>, vector<1x1x128xf32>
    %58 = vector.shape_cast %57 : vector<1x1x128xf32> to vector<1x128xf32>
    %59 = vector.broadcast %58 : vector<1x128xf32> to vector<16x128xf32>
    %60 = arith.addf %56, %59 : vector<16x128xf32>
    %61 = arith.truncf %60 : vector<16x128xf32> to vector<16x128xbf16>
    %c0_36 = arith.constant 0 : index
    %c0_37 = arith.constant 0 : index
    %62 = vector.load %arg15[%c0_36, %c0_37] : memref<40x128xbf16, #tpu.memory_space<vmem>>, vector<16x128xbf16>
    tpu.vector_store %arg15[%c0_36, %c0_37], %61 {strides = array<i32>} : memref<40x128xbf16, #tpu.memory_space<vmem>>, vector<16x128xbf16>,
    %63 = arith.truncf %4 : vector<24x128xf32> to vector<24x128xbf16>
    %c16 = arith.constant 16 : index
    %c0_38 = arith.constant 0 : index
    %64 = vector.load %arg15[%c16, %c0_38] : memref<40x128xbf16, #tpu.memory_space<vmem>>, vector<24x128xbf16>
    tpu.vector_store %arg15[%c16, %c0_38], %63 {strides = array<i32>} : memref<40x128xbf16, #tpu.memory_space<vmem>>, vector<24x128xbf16>,
    %c0_39 = arith.constant 0 : index
    %c0_40 = arith.constant 0 : index
    %65 = vector.load %arg4[%c0_39, %c0_40] : memref<24x40xbf16, #tpu.memory_space<vmem>>, vector<24x40xbf16>
    %c0_41 = arith.constant 0 : index
    %c0_42 = arith.constant 0 : index
    %66 = vector.load %arg15[%c0_41, %c0_42] : memref<40x128xbf16, #tpu.memory_space<vmem>>, vector<40x128xbf16>
    %cst_43 = arith.constant dense<0.000000e+00> : vector<24x128xf32>
    %67 = tpu.matmul %65, %66, %cst_43 {dimension_numbers = #tpu.dot_dimension_numbers<[1], [0], [0], [1], [0, 0, 1, 1], [], []>} : vector<24x40xbf16>, vector<40x128xbf16>, vector<24x128xf32> -> vector<24x128xf32>
    %68 = arith.addf %4, %67 : vector<24x128xf32>
    %69 = arith.truncf %68 : vector<24x128xf32> to vector<24x128xbf16>
    %c0_44 = arith.constant 0 : index
    %c0_45 = arith.constant 0 : index
    %c0_46 = arith.constant 0 : index
    %70 = vector.load %arg8[%c0_44, %c0_45, %c0_46] : memref<1x128x128xbf16, #tpu.memory_space<vmem>>, vector<1x128x128xbf16>
    %71 = vector.shape_cast %70 : vector<1x128x128xbf16> to vector<128x128xbf16>
    %cst_47 = arith.constant dense<0.000000e+00> : vector<24x128xf32>
    %72 = tpu.matmul %69, %71, %cst_47 {dimension_numbers = #tpu.dot_dimension_numbers<[1], [0], [0], [1], [0, 0, 1, 1], [], []>} : vector<24x128xbf16>, vector<128x128xbf16>, vector<24x128xf32> -> vector<24x128xf32>
    %c0_48 = arith.constant 0 : index
    %c1_49 = arith.constant 1 : index
    %c0_50 = arith.constant 0 : index
    %73 = vector.load %arg10[%c0_48, %c1_49, %c0_50] : memref<1x4x128xf32, #tpu.memory_space<vmem>>, vector<1x1x128xf32>
    %74 = vector.shape_cast %73 : vector<1x1x128xf32> to vector<1x128xf32>
    %75 = vector.broadcast %74 : vector<1x128xf32> to vector<24x128xf32>
    %76 = arith.addf %72, %75 : vector<24x128xf32>
    %c0_51 = arith.constant 0 : index
    %c2_52 = arith.constant 2 : index
    %c0_53 = arith.constant 0 : index
    %77 = vector.load %arg10[%c0_51, %c2_52, %c0_53] : memref<1x4x128xf32, #tpu.memory_space<vmem>>, vector<1x1x128xf32>
    %78 = vector.shape_cast %77 : vector<1x1x128xf32> to vector<1x128xf32>
    %c0_54 = arith.constant 0 : index
    %c3_55 = arith.constant 3 : index
    %c0_56 = arith.constant 0 : index
    %79 = vector.load %arg10[%c0_54, %c3_55, %c0_56] : memref<1x4x128xf32, #tpu.memory_space<vmem>>, vector<1x1x128xf32>
    %80 = vector.shape_cast %79 : vector<1x1x128xf32> to vector<1x128xf32>
    %cst_57 = arith.constant dense<0.000000e+00> : vector<128xf32>
    %81 = vector.multi_reduction <add>, %76, %cst_57 [0] : vector<24x128xf32> to vector<128xf32>
    %82 = vector.shape_cast %81 : vector<128xf32> to vector<1x128xf32>
    %cst_58 = arith.constant 2.400000e+01 : f32
    %83 = vector.broadcast %cst_58 : f32 to vector<1x128xf32>
    %84 = arith.divf %82, %83 : vector<1x128xf32>
    %85 = vector.broadcast %84 : vector<1x128xf32> to vector<24x128xf32>
    %86 = arith.subf %76, %85 : vector<24x128xf32>
    %87 = arith.mulf %86, %86 : vector<24x128xf32>
    %cst_59 = arith.constant dense<0.000000e+00> : vector<128xf32>
    %88 = vector.multi_reduction <add>, %87, %cst_59 [0] : vector<24x128xf32> to vector<128xf32>
    %89 = vector.shape_cast %88 : vector<128xf32> to vector<1x128xf32>
    %cst_60 = arith.constant 2.400000e+01 : f32
    %90 = vector.broadcast %cst_60 : f32 to vector<1x128xf32>
    %91 = arith.divf %89, %90 : vector<1x128xf32>
    %cst_61 = arith.constant 9.99999974E-6 : f32
    %92 = vector.broadcast %cst_61 : f32 to vector<1x128xf32>
    %93 = arith.addf %91, %92 : vector<1x128xf32>
    %94 = math.rsqrt %93 : vector<1x128xf32>
    %95 = arith.mulf %78, %94 : vector<1x128xf32>
    %96 = arith.mulf %84, %95 : vector<1x128xf32>
    %97 = arith.subf %80, %96 : vector<1x128xf32>
    %98 = vector.broadcast %95 : vector<1x128xf32> to vector<24x128xf32>
    %99 = arith.mulf %76, %98 : vector<24x128xf32>
    %100 = vector.broadcast %97 : vector<1x128xf32> to vector<24x128xf32>
    %101 = arith.addf %99, %100 : vector<24x128xf32>
    %cst_62 = arith.constant 0.00999999977 : f32
    %102 = vector.broadcast %cst_62 : f32 to vector<24x128xf32>
    %103 = arith.mulf %102, %101 : vector<24x128xf32>
    %104 = arith.maximumf %101, %103 : vector<24x128xf32>
    %c0_63 = arith.constant 0 : index
    %c0_64 = arith.constant 0 : index
    %105 = vector.load %arg13[%c0_63, %c0_64] : memref<16x128xf32, #tpu.memory_space<vmem>>, vector<16x128xf32>
    tpu.vector_store %arg13[%c0_63, %c0_64], %52 {strides = array<i32>} : memref<16x128xf32, #tpu.memory_space<vmem>>, vector<16x128xf32>,
    %c0_65 = arith.constant 0 : index
    %c0_66 = arith.constant 0 : index
    %106 = vector.load %arg14[%c0_65, %c0_66] : memref<24x128xf32, #tpu.memory_space<vmem>>, vector<24x128xf32>
    tpu.vector_store %arg14[%c0_65, %c0_66], %104 {strides = array<i32>} : memref<24x128xf32, #tpu.memory_space<vmem>>, vector<24x128xf32>,
    %c1_i32 = arith.constant 1 : i32
    %107 = arith.cmpi eq, %arg0, %c1_i32 : i32
    %108 = arith.extui %107 : i1 to i32
    %c0_i32_67 = arith.constant 0 : i32
    %109 = arith.cmpi ne, %108, %c0_i32_67 : i32
    scf.if %109 {
      %c0_68 = arith.constant 0 : index
      %c0_69 = arith.constant 0 : index
      %110 = vector.load %arg11[%c0_68, %c0_69] : memref<16x128xf32, #tpu.memory_space<vmem>>, vector<16x128xf32>
      tpu.vector_store %arg11[%c0_68, %c0_69], %52 {strides = array<i32>} : memref<16x128xf32, #tpu.memory_space<vmem>>, vector<16x128xf32>,
      %111 = arith.truncf %52 : vector<16x128xf32> to vector<16x128xbf16>
      %c0_70 = arith.constant 0 : index
      %c0_71 = arith.constant 0 : index
      %c0_72 = arith.constant 0 : index
      %112 = vector.load %arg7[%c0_70, %c0_71, %c0_72] : memref<1x128x128xbf16, #tpu.memory_space<vmem>>, vector<1x128x128xbf16>
      %113 = vector.shape_cast %112 : vector<1x128x128xbf16> to vector<128x128xbf16>
      %cst_73 = arith.constant dense<0.000000e+00> : vector<16x128xf32>
      %114 = tpu.matmul %111, %113, %cst_73 {dimension_numbers = #tpu.dot_dimension_numbers<[1], [0], [0], [1], [0, 0, 1, 1], [], []>} : vector<16x128xbf16>, vector<128x128xbf16>, vector<16x128xf32> -> vector<16x128xf32>
      %c0_74 = arith.constant 0 : index
      %c0_75 = arith.constant 0 : index
      %c0_76 = arith.constant 0 : index
      %115 = vector.load %arg10[%c0_74, %c0_75, %c0_76] : memref<1x4x128xf32, #tpu.memory_space<vmem>>, vector<1x1x128xf32>
      %116 = vector.shape_cast %115 : vector<1x1x128xf32> to vector<1x128xf32>
      %117 = vector.broadcast %116 : vector<1x128xf32> to vector<16x128xf32>
      %118 = arith.addf %114, %117 : vector<16x128xf32>
      %119 = arith.truncf %118 : vector<16x128xf32> to vector<16x128xbf16>
      %c0_77 = arith.constant 0 : index
      %c0_78 = arith.constant 0 : index
      %120 = vector.load %arg15[%c0_77, %c0_78] : memref<40x128xbf16, #tpu.memory_space<vmem>>, vector<16x128xbf16>
      tpu.vector_store %arg15[%c0_77, %c0_78], %119 {strides = array<i32>} : memref<40x128xbf16, #tpu.memory_space<vmem>>, vector<16x128xbf16>,
      %121 = arith.truncf %104 : vector<24x128xf32> to vector<24x128xbf16>
      %c16_79 = arith.constant 16 : index
      %c0_80 = arith.constant 0 : index
      %122 = vector.load %arg15[%c16_79, %c0_80] : memref<40x128xbf16, #tpu.memory_space<vmem>>, vector<24x128xbf16>
      tpu.vector_store %arg15[%c16_79, %c0_80], %121 {strides = array<i32>} : memref<40x128xbf16, #tpu.memory_space<vmem>>, vector<24x128xbf16>,
      %c0_81 = arith.constant 0 : index
      %c0_82 = arith.constant 0 : index
      %123 = vector.load %arg4[%c0_81, %c0_82] : memref<24x40xbf16, #tpu.memory_space<vmem>>, vector<24x40xbf16>
      %c0_83 = arith.constant 0 : index
      %c0_84 = arith.constant 0 : index
      %124 = vector.load %arg15[%c0_83, %c0_84] : memref<40x128xbf16, #tpu.memory_space<vmem>>, vector<40x128xbf16>
      %cst_85 = arith.constant dense<0.000000e+00> : vector<24x128xf32>
      %125 = tpu.matmul %123, %124, %cst_85 {dimension_numbers = #tpu.dot_dimension_numbers<[1], [0], [0], [1], [0, 0, 1, 1], [], []>} : vector<24x40xbf16>, vector<40x128xbf16>, vector<24x128xf32> -> vector<24x128xf32>
      %126 = arith.addf %104, %125 : vector<24x128xf32>
      %127 = arith.truncf %126 : vector<24x128xf32> to vector<24x128xbf16>
      %c0_86 = arith.constant 0 : index
      %c0_87 = arith.constant 0 : index
      %c0_88 = arith.constant 0 : index
      %128 = vector.load %arg8[%c0_86, %c0_87, %c0_88] : memref<1x128x128xbf16, #tpu.memory_space<vmem>>, vector<1x128x128xbf16>
      %129 = vector.shape_cast %128 : vector<1x128x128xbf16> to vector<128x128xbf16>
      %cst_89 = arith.constant dense<0.000000e+00> : vector<24x128xf32>
      %130 = tpu.matmul %127, %129, %cst_89 {dimension_numbers = #tpu.dot_dimension_numbers<[1], [0], [0], [1], [0, 0, 1, 1], [], []>} : vector<24x128xbf16>, vector<128x128xbf16>, vector<24x128xf32> -> vector<24x128xf32>
      %c0_90 = arith.constant 0 : index
      %c1_91 = arith.constant 1 : index
      %c0_92 = arith.constant 0 : index
      %131 = vector.load %arg10[%c0_90, %c1_91, %c0_92] : memref<1x4x128xf32, #tpu.memory_space<vmem>>, vector<1x1x128xf32>
      %132 = vector.shape_cast %131 : vector<1x1x128xf32> to vector<1x128xf32>
      %133 = vector.broadcast %132 : vector<1x128xf32> to vector<24x128xf32>
      %134 = arith.addf %130, %133 : vector<24x128xf32>
      %c0_93 = arith.constant 0 : index
      %c2_94 = arith.constant 2 : index
      %c0_95 = arith.constant 0 : index
      %135 = vector.load %arg10[%c0_93, %c2_94, %c0_95] : memref<1x4x128xf32, #tpu.memory_space<vmem>>, vector<1x1x128xf32>
      %136 = vector.shape_cast %135 : vector<1x1x128xf32> to vector<1x128xf32>
      %c0_96 = arith.constant 0 : index
      %c3_97 = arith.constant 3 : index
      %c0_98 = arith.constant 0 : index
      %137 = vector.load %arg10[%c0_96, %c3_97, %c0_98] : memref<1x4x128xf32, #tpu.memory_space<vmem>>, vector<1x1x128xf32>
      %138 = vector.shape_cast %137 : vector<1x1x128xf32> to vector<1x128xf32>
      %cst_99 = arith.constant dense<0.000000e+00> : vector<128xf32>
      %139 = vector.multi_reduction <add>, %134, %cst_99 [0] : vector<24x128xf32> to vector<128xf32>
      %140 = vector.shape_cast %139 : vector<128xf32> to vector<1x128xf32>
      %cst_100 = arith.constant 2.400000e+01 : f32
      %141 = vector.broadcast %cst_100 : f32 to vector<1x128xf32>
      %142 = arith.divf %140, %141 : vector<1x128xf32>
      %143 = vector.broadcast %142 : vector<1x128xf32> to vector<24x128xf32>
      %144 = arith.subf %134, %143 : vector<24x128xf32>
      %145 = arith.mulf %144, %144 : vector<24x128xf32>
      %cst_101 = arith.constant dense<0.000000e+00> : vector<128xf32>
      %146 = vector.multi_reduction <add>, %145, %cst_101 [0] : vector<24x128xf32> to vector<128xf32>
      %147 = vector.shape_cast %146 : vector<128xf32> to vector<1x128xf32>
      %cst_102 = arith.constant 2.400000e+01 : f32
      %148 = vector.broadcast %cst_102 : f32 to vector<1x128xf32>
      %149 = arith.divf %147, %148 : vector<1x128xf32>
      %cst_103 = arith.constant 9.99999974E-6 : f32
      %150 = vector.broadcast %cst_103 : f32 to vector<1x128xf32>
      %151 = arith.addf %149, %150 : vector<1x128xf32>
      %152 = math.rsqrt %151 : vector<1x128xf32>
      %153 = arith.mulf %136, %152 : vector<1x128xf32>
      %154 = arith.mulf %142, %153 : vector<1x128xf32>
      %155 = arith.subf %138, %154 : vector<1x128xf32>
      %156 = vector.broadcast %153 : vector<1x128xf32> to vector<24x128xf32>
      %157 = arith.mulf %134, %156 : vector<24x128xf32>
      %158 = vector.broadcast %155 : vector<1x128xf32> to vector<24x128xf32>
      %159 = arith.addf %157, %158 : vector<24x128xf32>
      %cst_104 = arith.constant 0.00999999977 : f32
      %160 = vector.broadcast %cst_104 : f32 to vector<24x128xf32>
      %161 = arith.mulf %160, %159 : vector<24x128xf32>
      %162 = arith.maximumf %159, %161 : vector<24x128xf32>
      %c0_105 = arith.constant 0 : index
      %c0_106 = arith.constant 0 : index
      %163 = vector.load %arg12[%c0_105, %c0_106] : memref<24x128xf32, #tpu.memory_space<vmem>>, vector<24x128xf32>
      tpu.vector_store %arg12[%c0_105, %c0_106], %162 {strides = array<i32>} : memref<24x128xf32, #tpu.memory_space<vmem>>, vector<24x128xf32>,
    } else {
    }
    return
  }
  func.func @transform_0(%arg0: i32) -> (i32, i32) {
    %c0_i32 = arith.constant 0 : i32
    %c0_i32_0 = arith.constant 0 : i32
    %c0_i32_1 = arith.constant 0 : i32
    return %c0_i32, %c0_i32_0 : i32, i32
  }
  func.func @transform_1(%arg0: i32) -> (i32, i32) {
    %c0_i32 = arith.constant 0 : i32
    %c0_i32_0 = arith.constant 0 : i32
    %c0_i32_1 = arith.constant 0 : i32
    return %c0_i32, %c0_i32_0 : i32, i32
  }
  func.func @transform_2(%arg0: i32) -> (i32, i32) {
    %c0_i32 = arith.constant 0 : i32
    %c0_i32_0 = arith.constant 0 : i32
    %c0_i32_1 = arith.constant 0 : i32
    return %c0_i32, %c0_i32_0 : i32, i32
  }
  func.func @transform_3(%arg0: i32) -> (i32, i32) {
    %c0_i32 = arith.constant 0 : i32
    %c0_i32_0 = arith.constant 0 : i32
    %c0_i32_1 = arith.constant 0 : i32
    return %c0_i32, %c0_i32_0 : i32, i32
  }
  func.func @transform_4(%arg0: i32) -> (i32, i32, i32) {
    %c0_i32 = arith.constant 0 : i32
    %c0_i32_0 = arith.constant 0 : i32
    %c0_i32_1 = arith.constant 0 : i32
    return %arg0, %c0_i32, %c0_i32_0 : i32, i32, i32
  }
  func.func @transform_5(%arg0: i32) -> (i32, i32, i32) {
    %c0_i32 = arith.constant 0 : i32
    %c0_i32_0 = arith.constant 0 : i32
    %c0_i32_1 = arith.constant 0 : i32
    return %arg0, %c0_i32, %c0_i32_0 : i32, i32, i32
  }
  func.func @transform_6(%arg0: i32) -> (i32, i32, i32) {
    %c0_i32 = arith.constant 0 : i32
    %c0_i32_0 = arith.constant 0 : i32
    %c0_i32_1 = arith.constant 0 : i32
    return %arg0, %c0_i32, %c0_i32_0 : i32, i32, i32
  }
  func.func @transform_7(%arg0: i32) -> (i32, i32, i32) {
    %c0_i32 = arith.constant 0 : i32
    %c0_i32_0 = arith.constant 0 : i32
    %c0_i32_1 = arith.constant 0 : i32
    return %arg0, %c0_i32, %c0_i32_0 : i32, i32, i32
  }
  func.func @transform_8(%arg0: i32) -> (i32, i32, i32) {
    %c0_i32 = arith.constant 0 : i32
    %c0_i32_0 = arith.constant 0 : i32
    %c0_i32_1 = arith.constant 0 : i32
    return %arg0, %c0_i32, %c0_i32_0 : i32, i32, i32
  }
  func.func @transform_9(%arg0: i32) -> (i32, i32, i32) {
    %c0_i32 = arith.constant 0 : i32
    %c0_i32_0 = arith.constant 0 : i32
    %c0_i32_1 = arith.constant 0 : i32
    return %arg0, %c0_i32, %c0_i32_0 : i32, i32, i32
  }
  func.func @transform_10(%arg0: i32) -> (i32, i32) {
    %c0_i32 = arith.constant 0 : i32
    %c0_i32_0 = arith.constant 0 : i32
    %c0_i32_1 = arith.constant 0 : i32
    return %c0_i32, %c0_i32_0 : i32, i32
  }
  func.func @transform_11(%arg0: i32) -> (i32, i32) {
    %c0_i32 = arith.constant 0 : i32
    %c0_i32_0 = arith.constant 0 : i32
    %c0_i32_1 = arith.constant 0 : i32
    return %c0_i32, %c0_i32_0 : i32, i32
  }
}

</mosaic_0001>

<bundles_post_ra>
// kernel: graph_convolution_forward.1
= control target key start
LH: loop header
LB: loop body
LE: loop exit
PB: predicated region body
PF: predicated region fallthrough
CT: control target
= control target key end

     0   :  { %17 = vsyncpa [#allocation6], 0  ;;  %s2611_s0 = inlined_call_operand.vmem [shape: f32[16,128], index: 0, kind: input, shape index: {}]   ;;  %s2612_s1 = inlined_call_operand.vmem [shape: f32[24,128], index: 1, kind: input, shape index: {}]   ;;  %s2613_s2 = inlined_call_operand.vmem [shape: bf16[16,24], index: 2, kind: input, shape index: {}]   ;;  %s2614_s3 = inlined_call_operand.vmem [shape: bf16[24,40], index: 3, kind: input, shape index: {}]   ;;  %s2615_s4 = inlined_call_operand.vmem [shape: bf16[2,128,128], index: 4, kind: input, shape index: {}]   ;;  %s2616_s5 = inlined_call_operand.vmem [shape: bf16[2,128,128], index: 5, kind: input, shape index: {}]   ;;  %s2617_s6 = inlined_call_operand.vmem [shape: bf16[2,128,128], index: 6, kind: input, shape index: {}]   ;;  %s2618_s7 = inlined_call_operand.vmem [shape: bf16[2,128,128], index: 7, kind: input, shape index: {}]   ;;  %s2619_s8 = inlined_call_operand.vmem [shape: f32[2,4,128], index: 8, kind: input, shape index: {}]   ;;  %s2620_s9 = inlined_call_operand.vmem [shape: f32[2,4,128], index: 9, kind: input, shape index: {}]   ;;  %s2621_s10 = inlined_call_operand.hbm [shape: f32[16,128], index: 10, kind: output, shape index: {0}]   ;;  %s2622_s11 = inlined_call_operand.hbm [shape: f32[24,128], index: 11, kind: output, shape index: {1}]  }
   0x1   :  { %18 = vsyncpa [#allocation8], 0  ;;  %s2349_s17 = smov 0  }
   0x2 LB: > { %s2355_s18 = sadd.s32 4294967295, %s2279_s17   ;;  %p1765_p0 = scmp.ge.s32.totalorder %s2279_s17, 1  ;;  %s2279_s17 = sphi %s2349_s17, %s24_s17  }
   0x3   : > { %p380_p1 = scmp.lt.s32.totalorder %s2279_s17, 3 }
   0x5   : > { %p381_p2 = pnand %p1765_p0, %p380_p1 }
   0x6   : > { %p438_p3 = scmp.lt.s32.totalorder (!%p381_p2), %s2355_s18, 1  ;;  %p1776_p4 = scmp.ne.s32.totalorder (!%p381_p2), %s2355_s18, 0 }
   0x7   : > { %384 = sbr.rel (%p381_p2) target bundleno = 1783 (0x6f7), region = 60 }
   0xe   : > { %s439_s19 = scalar_select %p438_p3, %s2355_s18, 1 }
   0xf   : > { %470 = sbr.rel (%p1776_p4) target bundleno = 22 (0x16), region = 64  ;;  %v471_v0 = vld [vmem:[%s2611_s0] sm:$0xff] (!%p1776_p4)  ;;  %v472_v1 = vld [vmem:[%s2611_s0 + $0x8] sm:$0xff] (!%p1776_p4)  ;;  %v477_v4 = vld [vmem:[%s2612_s1 + $0x10] sm:$0xff] (!%p1776_p4) }
  0x10   : > { %s1864_s20 = sshll.u32 %s439_s19, 6  ;;  %s1774_s21 = sshll.u32 %s439_s19, 2  ;;  %v475_v2 = vld [vmem:[%s2612_s1] sm:$0xff] (!%p1776_p4)  ;;  %473 = vst [vmem:[#allocation2] sm:$0xff] (!%p1776_p4), %v471_v0  ;;  %474 = vst [vmem:[#allocation2 + $0x8] sm:$0xff] (!%p1776_p4), %v472_v1  ;;  %v476_v3 = vld [vmem:[%s2612_s1 + $0x8] sm:$0xff] (!%p1776_p4) }
  0x11   : > { %s2364_s24 = scalar_lea.vmem %s2615_s4, %s1864_s20  ;;  %s2369_s27 = scalar_lea.vmem %s2616_s5, %s1864_s20  ;;  %478 = vst [vmem:[#allocation3] sm:$0xff] (!%p1776_p4), %v475_v2  ;;  %479 = vst [vmem:[#allocation3 + $0x8] sm:$0xff] (!%p1776_p4), %v476_v3 }
  0x12   : > { %s2374_s30 = scalar_lea.vmem %s2617_s6, %s1864_s20  ;;  %s2379_s14 = scalar_lea.vmem %s2618_s7, %s1864_s20  ;;  %480 = vst [vmem:[#allocation3 + $0x10] sm:$0xff] (!%p1776_p4), %v477_v4 }
  0x13   : > { %s2384_s19 = scalar_lea.vmem %s2619_s8, %s1774_s21  ;;  %s2389_s25 = scalar_lea.vmem %s2620_s9, %s1774_s21 }
  0x16 PF: > { %v2148_v5 = vld [vmem:[%s2364_s24] sm:$0xff]   ;;  %v2149_v6 = vld [vmem:[%s2364_s24 + $0x8] sm:$0xff]   ;;  %v2150_v7 = vld [vmem:[%s2364_s24 + $0x10] sm:$0xff]   ;;  %v2281_v18 = vmov 0.0   ;;  %vm2282_vm0 = vmmov 0   ;;  %vm618_vm1 = vcmask 1043456  }
  0x17   : > { %1970 = vmatprep.subr.bf16.mxu0 %v2148_v5  ;;  %v2151_v8 = vld [vmem:[%s2364_s24 + $0x18] sm:$0xff]   ;;  %v2152_v14 = vld [vmem:[%s2364_s24 + $0x20] sm:$0xff]   ;;  %v2153_v15 = vld [vmem:[%s2364_s24 + $0x28] sm:$0xff]   ;;  %1998 = vmatprep.subr.bf16.mxu1 %v2281_v18  ;;  %vm614_vm2 = vcmask 195584   ;;  %vm986_vm3 = vcmask 326656   ;;  %p1827_p5 = scmp.ne.s32.totalorder %s2355_s18, 1 }
  0x18   : > { %1971 = vmatpush3.bf16.msra.mxu0 %v2148_v5  ;;  %v2411_v9 = vld [vmem:[#allocation3] sm:$0xff]  ;;  %v2413_v10 = vld [vmem:[#allocation3 + $0x8] sm:$0xff]  ;;  %2014 = vmatprep.mubr.msk.bf16.mxu1 %vm2282_vm0, %v2281_v18  ;;  %v2165_v19 = vld [vmem:[%s2369_s27] sm:$0xff]   ;;  %vm2284_vm4 = vmmov (!%p1827_p5), 0  }
  0x19   : > { %1972 = vmatprep.subr.bf16.mxu0 %v2149_v6  ;;  %v2415_v11 = vld [vmem:[#allocation3 + $0x10] sm:$0xff]  ;;  %v486_v12 = vpack.c.bf16 %v2413_v10, %v2411_v9  ;;  %v2154_v16 = vld [vmem:[%s2364_s24 + $0x30] sm:$0xff]   ;;  %v2155_v17 = vld [vmem:[%s2364_s24 + $0x38] sm:$0xff]   ;;  %1999 = vmatpush3.bf16.msra.mxu1 %v2165_v19 }
  0x1a   : > { %v487_v13 = vpack.c.bf16 %v2415_v11, %v2415_v11  ;;  %v2166_v20 = vld [vmem:[%s2369_s27 + $0x8] sm:$0xff]   ;;  %2000 = vmatprep.subr.bf16.mxu1 %v2281_v18  ;;  %v2167_v21 = vld [vmem:[%s2369_s27 + $0x10] sm:$0xff]   ;;  %v2168_v22 = vld [vmem:[%s2369_s27 + $0x18] sm:$0xff]  }
  0x1b   : > { %1986 = vmatprep.mubr.bf16.mxu0 %v486_v12  ;;  %1898 = vst [vmem:[#allocation4 + $0x8] sm:$0xff] %v486_v12   ;;  %v2169_v23 = vld [vmem:[%s2369_s27 + $0x20] sm:$0xff]   ;;  %v2170_v24 = vld [vmem:[%s2369_s27 + $0x28] sm:$0xff]   ;;  %v2159_v39 = vld [vmem:[%s2374_s30 + $0x10] sm:$0xff]  }
  0x1c   : > { %1973 = vmatpush3.bf16.msra.mxu0 %v2149_v6  ;;  %954 = vst [vmem:[#allocation4 + $0x10] sm:$0xf] %v487_v13  ;;  %v1777_v26 = vld [vmem:[%s2384_s19] ss:$0 sm:$0xff]  ;;  %v2158_v38 = vld [vmem:[%s2374_s30 + $0x8] sm:$0xff]   ;;  %v2160_v40 = vld [vmem:[%s2374_s30 + $0x18] sm:$0xff]  }
  0x1d   : > { %1974 = vmatprep.subr.bf16.mxu0 %v2150_v7  ;;  %2001 = vmatpush3.bf16.msra.mxu1 %v2166_v20  ;;  %v2156_v36 = vld [vmem:[%s2613_s2] sm:$0xff]   ;;  %v2162_v42 = vld [vmem:[%s2374_s30 + $0x28] sm:$0xff]   ;;  %v2163_v43 = vld [vmem:[%s2374_s30 + $0x30] sm:$0xff]  }
  0x1e   : > { %2002 = vmatprep.subr.bf16.mxu1 %v2281_v18  ;;  %v2157_v37 = vld [vmem:[%s2374_s30] sm:$0xff]   ;;  %v2164_v44 = vld [vmem:[%s2374_s30 + $0x38] sm:$0xff]   ;;  %v482_v46 = vld [vmem:[#allocation2 + $0x8] sm:$0xff] }
  0x1f   : > { %v2161_v41 = vld [vmem:[%s2374_s30 + $0x20] sm:$0xff]   ;;  %v2171_v48 = vld [vmem:[%s2369_s27 + $0x30] sm:$0xff]   ;;  %v2172_v49 = vld [vmem:[%s2369_s27 + $0x38] sm:$0xff]  }
  0x20   : > { %1975 = vmatpush3.bf16.msra.mxu0 %v2150_v7  ;;  %v481_v45 = vld [vmem:[#allocation2] sm:$0xff]  ;;  %v2177_v6 = vld [vmem:[%s2614_s3 + $0x8] ss:$0 sps:$4 sm:$0xff]   ;;  %v2180_v12 = vld [vmem:[%s2379_s14 + $0x10] sm:$0xff]  }
  0x21   : > { %1976 = vmatprep.subr.bf16.mxu0 %v2151_v8  ;;  %2003 = vmatpush3.bf16.msra.mxu1 %v2167_v21  ;;  %v820_v47 = vpack.c.bf16 %v482_v46, %v481_v45  ;;  %v2176_v56 = vld [vmem:[%s2614_s3] sm:$0xff]  }
  0x22   : > { %2004 = vmatprep.subr.bf16.mxu1 %v2281_v18  ;;  %v1797_v58 = vld [vmem:[%s2389_s25] ss:$0 sm:$0xff]  ;;  %v2174_v2 = vld [vmem:[#allocation4 + $0x8] sm:$0xff]  }
  0x23   : > { %v2175_v4 = vld [vmem:[#allocation4 + $0x10] ss:$0 sps:$4 sm:$0xff]   ;;  %v2178_v7 = vld [vmem:[%s2379_s14] sm:$0xff]  }
  0x24   : > { %1977 = vmatpush3.bf16.msra.mxu0 %v2151_v8  ;;  %v994_v5 = vsel %vm618_vm1, %v2175_v4, 0  ;;  %v2179_v8 = vld [vmem:[%s2379_s14 + $0x8] sm:$0xff]  }
  0x25   : > { %1978 = vmatprep.subr.bf16.mxu0 %v2152_v14  ;;  %2005 = vmatpush3.bf16.msra.mxu1 %v2168_v22 }
  0x26   : > { %2006 = vmatprep.subr.bf16.mxu1 %v2281_v18 }
  0x28   : > { %1979 = vmatpush3.bf16.msra.mxu0 %v2152_v14  ;;  %v2182_v14 = vld [vmem:[%s2379_s14 + $0x20] sm:$0xff]  }
  0x29   : > { %1980 = vmatprep.subr.bf16.mxu0 %v2153_v15  ;;  %2007 = vmatpush3.bf16.msra.mxu1 %v2169_v23 }
  0x2a   : > { %2008 = vmatprep.subr.bf16.mxu1 %v2281_v18 }
  0x2c   : > { %1981 = vmatpush3.bf16.msra.mxu0 %v2153_v15  ;;  %v2183_v15 = vld [vmem:[%s2379_s14 + $0x28] sm:$0xff]  }
  0x2d   : > { %1982 = vmatprep.subr.bf16.mxu0 %v2154_v16  ;;  %2009 = vmatpush3.bf16.msra.mxu1 %v2170_v24 }
  0x2e   : > { %2010 = vmatprep.subr.bf16.mxu1 %v2281_v18 }
  0x30   : > { %1983 = vmatpush3.bf16.msra.mxu0 %v2154_v16  ;;  %v2184_v16 = vld [vmem:[%s2379_s14 + $0x30] sm:$0xff]  }
  0x31   : > { %1984 = vmatprep.subr.bf16.mxu0 %v2155_v17  ;;  %2011 = vmatpush3.bf16.msra.mxu1 %v2171_v48  ;;  %v776_v48 = vld [vmem:[%s2384_s19 + $0x2] sm:$0x1] }
  0x32   : > { %2012 = vmatprep.subr.bf16.mxu1 %v2281_v18 }
  0x34   : > { %1985 = vmatpush3.bf16.msra.mxu0 %v2155_v17  ;;  %v2185_v17 = vld [vmem:[%s2379_s14 + $0x38] sm:$0xff]  }
  0x35   : > { %1990 = vmatprep.subr.bf16.mxu0 %v2281_v18  ;;  %2013 = vmatpush3.bf16.msra.mxu1 %v2172_v49 }
  0x37   : > { %1987 = vmatmul.mubr.bf16.vlgmr.msra.gmra.mrb[0].mxu0 %v487_v13  ;;  %v2181_v13 = vld [vmem:[%s2379_s14 + $0x18] sm:$0xff]  }
  0x38   : > { %1994 = vmatprep.mubr.msk.bf16.mxu0 %vm2282_vm0, %v2281_v18 }
 0x10a   : > { %v1988_v25 = vpop.f32.mrb[0].mxu0 }
 0x10b   : > { %v591_v27 = vpop.f32.mrb[1].mxu0  ;;  %v600_v29 = vadd.f32 %v1988_v25, %v1777_v26 }
 0x10c   : > { %v1989_v28 = vpop.f32.mrb[2].mxu0  ;;  %v592_v31 = vadd.f32 %v1777_v26, %v591_v27 }
 0x10d   : > { %v594_v30 = vpop.f32.mrb[3].mxu0  ;;  %v608_v34 = vpack.c.bf16 %v600_v29, %v600_v29 }
 0x10e   : > { %v595_v32 = vadd.f32 %v1777_v26, %v594_v30 }
 0x10f   : > { %v620_v35 = vsel %vm618_vm1, %v608_v34, 0 }
 0x110   : > { %v607_v33 = vpack.c.bf16 %v595_v32, %v592_v31 }
 0x112   : > { %1991 = vmatpush3.bf16.msra.mxu0 %v607_v33 }
 0x113   : > { %1992 = vmatprep.subr.bf16.mxu0 %v2281_v18 }
 0x116   : > { %1993 = vmatpush3.bf16.msra.mxu0 %v620_v35 }
 0x117   : > { %2018 = vmatprep.subr.bf16.mxu0 %v2281_v18 }
 0x119   : > { %1995 = vmatmul.mubr.msk.bf16.vlgmr.msra.gmra.mrb[4].mxu0 %vm614_vm2, %v2156_v36 }
 0x11a   : > { %2019 = vmatpush3.bf16.msra.mxu0 %v2157_v37  ;;  %2034 = vmatprep.mubr.msk.bf16.mxu0 %vm2282_vm0, %v2281_v18 }
 0x11b   : > { %2020 = vmatprep.subr.bf16.mxu0 %v2281_v18 }
 0x11e   : > { %2021 = vmatpush3.bf16.msra.mxu0 %v2158_v38 }
 0x11f   : > { %2022 = vmatprep.subr.bf16.mxu0 %v2281_v18 }
 0x122   : > { %2023 = vmatpush3.bf16.msra.mxu0 %v2159_v39 }
 0x123   : > { %2024 = vmatprep.subr.bf16.mxu0 %v2281_v18 }
 0x126   : > { %2025 = vmatpush3.bf16.msra.mxu0 %v2160_v40 }
 0x127   : > { %2026 = vmatprep.subr.bf16.mxu0 %v2281_v18 }
 0x12a   : > { %2027 = vmatpush3.bf16.msra.mxu0 %v2161_v41 }
 0x12b   : > { %2028 = vmatprep.subr.bf16.mxu0 %v2281_v18 }
 0x12e   : > { %2029 = vmatpush3.bf16.msra.mxu0 %v2162_v42 }
 0x12f   : > { %2030 = vmatprep.subr.bf16.mxu0 %v2281_v18 }
 0x132   : > { %2031 = vmatpush3.bf16.msra.mxu0 %v2163_v43 }
 0x133   : > { %2032 = vmatprep.subr.bf16.mxu0 %v2281_v18  ;;  %v1788_v18 = vld [vmem:[%s2384_s19 + $0x1] ss:$0 sm:$0xff] }
 0x136   : > { %2033 = vmatpush3.bf16.msra.mxu0 %v2164_v44 }
 0x139   : > { %2035 = vmatmul.mubr.bf16.vlgmr.msra.gmra.mrb[8].mxu0 %v820_v47 }
 0x1ec   : > { %v656_v50 = vpop.f32.mrb[4].mxu0 }
 0x1ed   : > { %v663_v51 = vadd.f32 %v656_v50, %v481_v45  ;;  %v1996_v52 = vpop.f32.mrb[5].mxu0 }
 0x1ee   : > { %v659_v53 = vpop.f32.mrb[6].mxu0 }
 0x1ef   : > { %v664_v54 = vadd.f32 %v659_v53, %v482_v46  ;;  %v1997_v55 = vpop.f32.mrb[7].mxu0  ;;  %v804_v46 = vlaneseq }
 0x1f1   : > { %v665_v57 = vpack.c.bf16 %v664_v54, %v663_v51  ;;  %v805_v47 = vshrl.u32 %v804_v46, 7  ;;  %v777_v54 = vld [vmem:[%s2384_s19 + $0x3] sm:$0x1] }
 0x1f2   : > { %v1167_v46 = vld [vmem:[%s2389_s25 + $0x3] sm:$0x1] }
 0x1f3   : > { %2015 = vmatmul.mubr.bf16.vlgmr.msra.gmra.mrb[0].mxu1 %v665_v57  ;;  %v2491_v49 = vsub.s32 0, %v805_v47 }
 0x1f4   : > { %2044 = vmatprep.mubr.msk.bf16.mxu1 %vm986_vm3, %v2176_v56 }
 0x20c   : > { %v924_v59 = vpop.f32.mrb[8].mxu0 }
 0x20d   : > { %v2036_v60 = vpop.f32.mrb[9].mxu0  ;;  %v925_v62 = vadd.f32 %v1797_v58, %v924_v59 }
 0x20e   : > { %v927_v61 = vpop.f32.mrb[10].mxu0 }
 0x20f   : > { %v928_v63 = vadd.f32 %v1797_v58, %v927_v61  ;;  %v2037_v0 = vpop.f32.mrb[11].mxu0 }
 0x211   : > { %v1881_v1 = vpack.c.bf16 %v928_v63, %v925_v62 }
 0x213   : > { %1882 = vst [vmem:[#allocation4] sm:$0xff] %v1881_v1  }
 0x21a   : > { %v2173_v3 = vld [vmem:[#allocation4] sm:$0xff]  }
 0x21b   : > { %2038 = vmatprep.subr.bf16.mxu1 %v2173_v3 }
 0x21c   : > { %2039 = vmatpush3.bf16.msra.mxu1 %v2173_v3 }
 0x21d   : > { %2040 = vmatprep.subr.bf16.mxu1 %v2174_v2 }
 0x220   : > { %2041 = vmatpush3.bf16.msra.mxu1 %v2174_v2 }
 0x221   : > { %2118 = vmatprep.subr.msk.bf16.mxu1 %vm618_vm1, %v2175_v4 }
 0x224   : > { %2043 = vmatpush3.bf16.msra.mxu1 %v994_v5 }
 0x225   : > { %2048 = vmatprep.subr.bf16.mxu1 %v2178_v7 }
 0x227   : > { %2045 = vmatmul.mubr.msk.bf16.vlgmr.msra.gmra.mrb[4].mxu1 %vm986_vm3, %v2177_v6 }
 0x228   : > { %2049 = vmatpush3.bf16.msra.mxu1 %v2178_v7 }
 0x229   : > { %2050 = vmatprep.subr.bf16.mxu1 %v2179_v8 }
 0x22c   : > { %2051 = vmatpush3.bf16.msra.mxu1 %v2179_v8 }
 0x22d   : > { %2052 = vmatprep.subr.bf16.mxu1 %v2180_v12 }
 0x230   : > { %2053 = vmatpush3.bf16.msra.mxu1 %v2180_v12 }
 0x231   : > { %2054 = vmatprep.subr.bf16.mxu1 %v2181_v13 }
 0x234   : > { %2055 = vmatpush3.bf16.msra.mxu1 %v2181_v13 }
 0x235   : > { %2056 = vmatprep.subr.bf16.mxu1 %v2182_v14 }
 0x238   : > { %2057 = vmatpush3.bf16.msra.mxu1 %v2182_v14 }
 0x239   : > { %2058 = vmatprep.subr.bf16.mxu1 %v2183_v15 }
 0x23c   : > { %2059 = vmatpush3.bf16.msra.mxu1 %v2183_v15 }
 0x23d   : > { %2060 = vmatprep.subr.bf16.mxu1 %v2184_v16 }
 0x240   : > { %2061 = vmatpush3.bf16.msra.mxu1 %v2184_v16 }
 0x241   : > { %2062 = vmatprep.subr.bf16.mxu1 %v2185_v17 }
 0x244   : > { %2063 = vmatpush3.bf16.msra.mxu1 %v2185_v17 }
 0x2c6   : > { %v769_v19 = vpop.f32.mrb[0].mxu1 }
 0x2c7   : > { %v2016_v20 = vpop.f32.mrb[1].mxu1  ;;  %v770_v22 = vadd.f32 %v1788_v18, %v769_v19 }
 0x2c8   : > { %v772_v21 = vpop.f32.mrb[2].mxu1 }
 0x2c9   : > { %v773_v23 = vadd.f32 %v1788_v18, %v772_v21  ;;  %v2017_v24 = vpop.f32.mrb[3].mxu1 }
 0x2cb   : > { %v778_v25 = vadd.f32 %v773_v23, %v770_v22 }
 0x2cd   : > { %v779_v26 = vrot.slane %v778_v25, 4 }
 0x2cf   : > { %v780_v27 = vadd.f32 %v779_v26, %v778_v25 }
 0x2d1   : > { %v781_v28 = vrot.slane %v780_v27, 2 }
 0x2d3   : > { %v782_v29 = vadd.f32 %v781_v28, %v780_v27 }
 0x2d5   : > { %v783_v30 = vrot.slane %v782_v29, 1 }
 0x2d7   : > { %v784_v31 = vadd.f32 %v783_v30, %v782_v29 }
 0x2d9   : > { %v786_v32 = vmul.f32 0.0625, %v784_v31 }
 0x2db   : > { %v787_v33 = vsub.f32 %v770_v22, %v786_v32  ;;  %v788_v34 = vsub.f32 %v773_v23, %v786_v32 }
 0x2dd   : > { %v789_v35 = vmul.f32 %v787_v33, %v787_v33  ;;  %v790_v36 = vmul.f32 %v788_v34, %v788_v34 }
 0x2df   : > { %v791_v37 = vadd.f32 %v790_v36, %v789_v35 }
 0x2e1   : > { %v792_v38 = vrot.slane %v791_v37, 4 }
 0x2e3   : > { %v793_v39 = vadd.f32 %v792_v38, %v791_v37 }
 0x2e5   : > { %v794_v40 = vrot.slane %v793_v39, 2 }
 0x2e7   : > { %v795_v41 = vadd.f32 %v794_v40, %v793_v39 }
 0x2e9   : > { %v796_v42 = vrot.slane %v795_v41, 1 }
 0x2eb   : > { %v797_v43 = vadd.f32 %v796_v42, %v795_v41 }
 0x2ed   : > { %v798_v44 = vmul.f32 0.0625, %v797_v43  ;;  %v1166_v43 = vld [vmem:[%s2389_s25 + $0x2] sm:$0x1] }
 0x2ef   : > { %v799_v45 = vadd.f32 1e-05, %v798_v44 }
 0x2f1   : > { %2186 = vrsqrt.f32 %v799_v45 }
 0x2fa   : > { %v2046_v51 = vpop.f32.mrb[4].mxu1 }
 0x2fb   : > { %v2187_v50 = vpop.eup %2186  ;;  %v1030_v53 = vpop.f32.mrb[5].mxu1  ;;  %v1046_v58 = vadd.f32 %v2046_v51, %v2415_v11 }
 0x2fc   : > { %v801_v52 = vmul.f32 %v2187_v50, %v776_v48  ;;  %v2047_v55 = vpop.f32.mrb[6].mxu1  ;;  %v1044_v60 = vadd.f32 %v1030_v53, %v2411_v9 }
 0x2fd   : > { %v1033_v59 = vpop.f32.mrb[7].mxu1  ;;  %v1048_v3 = vpack.c.bf16 %v1046_v58, %v1046_v58 }
 0x2fe   : > { %v802_v56 = vmul.f32 %v801_v52, %v786_v32  ;;  %v807_v57 = vrot.slane %v801_v52, %v2491_v49  ;;  %v1045_v61 = vadd.f32 %v1033_v59, %v2413_v10  ;;  %v1818_v10 = vld [vmem:[%s2389_s25 + $0x1] ss:$0 sm:$0xff] }
 0x300   : > { %v803_v62 = vsub.f32 %v777_v54, %v802_v56  ;;  %v808_v63 = vmul.f32 %v807_v57, %v770_v22  ;;  %v809_v0 = vmul.f32 %v807_v57, %v773_v23  ;;  %v1047_v1 = vpack.c.bf16 %v1045_v61, %v1044_v60 }
 0x302   : > { %v813_v2 = vrot.slane %v803_v62, %v2491_v49  ;;  %2064 = vmatprep.mubr.bf16.mxu1 %v1047_v1  ;;  %v2283_v1 = vmov (!%p1827_p5), 0.0  }
 0x303   : > { %2065 = vmatmul.mubr.bf16.vlgmr.msra.gmra.mrb[8].mxu1 %v1048_v3  ;;  %2068 = vmatprep.subr.bf16.mxu0 (!%p1827_p5), %v2283_v1  ;;  %v2192_v3 = vld [vmem:[%s2374_s30 + $0x10] sm:$0xff] (!%p1827_p5)  }
 0x304   : > { %v814_v4 = vadd.f32 %v813_v2, %v808_v63  ;;  %v815_v5 = vadd.f32 %v813_v2, %v809_v0  ;;  %v2190_v0 = vld [vmem:[%s2374_s30] sm:$0xff] (!%p1827_p5)   ;;  %v2191_v2 = vld [vmem:[%s2374_s30 + $0x8] sm:$0xff] (!%p1827_p5)   ;;  %2084 = vmatprep.mubr.msk.bf16.mxu0 (!%p1827_p5), %vm2284_vm4, %v2283_v1 }
 0x305   : > { %2069 = vmatpush3.bf16.msra.mxu0 (!%p1827_p5), %v2190_v0 }
 0x306   : > { %v816_v6 = vmul.f32 0.01, %v814_v4  ;;  %v817_v7 = vmul.f32 0.01, %v815_v5  ;;  %2070 = vmatprep.subr.bf16.mxu0 (!%p1827_p5), %v2283_v1 }
 0x308   : > { %v2499_v11 = vmax.f32 %v814_v4, %v816_v6  ;;  %v2501_v8 = vmax.f32 %v815_v5, %v817_v7  ;;  %v2193_v4 = vld [vmem:[%s2374_s30 + $0x18] sm:$0xff] (!%p1827_p5)   ;;  %v2194_v5 = vld [vmem:[%s2374_s30 + $0x20] sm:$0xff] (!%p1827_p5)   ;;  %v2195_v6 = vld [vmem:[%s2374_s30 + $0x28] sm:$0xff] (!%p1827_p5)  }
 0x309   : > { %2071 = vmatpush3.bf16.msra.mxu0 (!%p1827_p5), %v2191_v2  ;;  %v2196_v7 = vld [vmem:[%s2374_s30 + $0x30] sm:$0xff] (!%p1827_p5)  }
 0x30a   : > { %1218 = vst [vmem:[#allocation2] sm:$0xff] %v2499_v11  ;;  %1219 = vst [vmem:[#allocation2 + $0x8] sm:$0xff] %v2501_v8  ;;  %2072 = vmatprep.subr.bf16.mxu0 (!%p1827_p5), %v2283_v1 }
 0x30b   : > { %1227 = vst [vmem:[#allocation5] sm:$0xff] (!%p1827_p5), %v2499_v11  ;;  %1228 = vst [vmem:[#allocation5 + $0x8] sm:$0xff] (!%p1827_p5), %v2501_v8 }
 0x30d   : > { %2073 = vmatpush3.bf16.msra.mxu0 (!%p1827_p5), %v2192_v3 }
 0x30e   : > { %2074 = vmatprep.subr.bf16.mxu0 (!%p1827_p5), %v2283_v1 }
 0x311   : > { %2075 = vmatpush3.bf16.msra.mxu0 (!%p1827_p5), %v2193_v4 }
 0x312   : > { %2076 = vmatprep.subr.bf16.mxu0 (!%p1827_p5), %v2283_v1 }
 0x315   : > { %2077 = vmatpush3.bf16.msra.mxu0 (!%p1827_p5), %v2194_v5 }
 0x316   : > { %2078 = vmatprep.subr.bf16.mxu0 (!%p1827_p5), %v2283_v1 }
 0x319   : > { %2079 = vmatpush3.bf16.msra.mxu0 (!%p1827_p5), %v2195_v6 }
 0x31a   : > { %2080 = vmatprep.subr.bf16.mxu0 (!%p1827_p5), %v2283_v1 }
 0x31d   : > { %2081 = vmatpush3.bf16.msra.mxu0 (!%p1827_p5), %v2196_v7 }
 0x31e   : > { %2082 = vmatprep.subr.bf16.mxu0 (!%p1827_p5), %v2283_v1 }
 0x3d6   : > { %v2066_v9 = vpop.f32.mrb[8].mxu1 }
 0x3d7   : > { %v1152_v12 = vpop.f32.mrb[9].mxu1  ;;  %v1161_v17 = vadd.f32 %v2066_v9, %v1818_v10  ;;  %v2197_v9 = vld [vmem:[%s2374_s30 + $0x38] sm:$0xff] (!%p1827_p5)  }
 0x3d8   : > { %v2067_v13 = vpop.f32.mrb[10].mxu1  ;;  %v1153_v15 = vadd.f32 %v1818_v10, %v1152_v12  ;;  %2083 = vmatpush3.bf16.msra.mxu0 (!%p1827_p5), %v2197_v9 }
 0x3d9   : > { %v1155_v14 = vpop.f32.mrb[11].mxu1 }
 0x3da   : > { %v1156_v16 = vadd.f32 %v1818_v10, %v1155_v14  ;;  %v1229_v10 = vpack.c.bf16 (!%p1827_p5), %v2501_v8, %v2499_v11  ;;  %v2201_v14 = vld [vmem:[%s2614_s3] sm:$0xff] (!%p1827_p5)  }
 0x3db   : > { %2094 = vmatprep.mubr.msk.bf16.mxu1 (!%p1827_p5), %vm986_vm3, %v2201_v14 }
 0x3dc   : > { %v1168_v18 = vadd.f32 %v1156_v16, %v1153_v15  ;;  %2085 = vmatmul.mubr.bf16.vlgmr.msra.gmra.mrb[0].mxu0 (!%p1827_p5), %v1229_v10 }
 0x3de   : > { %v1169_v19 = vadd.f32 %v1168_v18, %v1161_v17 }
 0x3e0   : > { %v1170_v20 = vrot.slane %v1169_v19, 4 }
 0x3e2   : > { %v1171_v21 = vadd.f32 %v1170_v20, %v1169_v19 }
 0x3e4   : > { %v1172_v22 = vrot.slane %v1171_v21, 2 }
 0x3e6   : > { %v1173_v23 = vadd.f32 %v1172_v22, %v1171_v21 }
 0x3e8   : > { %v1174_v24 = vrot.slane %v1173_v23, 1 }
 0x3ea   : > { %v1175_v25 = vadd.f32 %v1174_v24, %v1173_v23 }
 0x3ec   : > { %v1177_v26 = vmul.f32 0.041666668, %v1175_v25  ;;  %v2203_v25 = vld [vmem:[%s2379_s14] sm:$0xff] (!%p1827_p5)  }
 0x3ee   : > { %v1178_v27 = vsub.f32 %v1153_v15, %v1177_v26  ;;  %v1179_v28 = vsub.f32 %v1156_v16, %v1177_v26  ;;  %v1180_v29 = vsub.f32 %v1161_v17, %v1177_v26 }
 0x3f0   : > { %v1181_v30 = vmul.f32 %v1178_v27, %v1178_v27  ;;  %v1182_v31 = vmul.f32 %v1179_v28, %v1179_v28  ;;  %v1183_v32 = vmul.f32 %v1180_v29, %v1180_v29  ;;  %v2204_v27 = vld [vmem:[%s2379_s14 + $0x8] sm:$0xff] (!%p1827_p5)   ;;  %v2205_v28 = vld [vmem:[%s2379_s14 + $0x10] sm:$0xff] (!%p1827_p5)   ;;  %v2206_v29 = vld [vmem:[%s2379_s14 + $0x18] sm:$0xff] (!%p1827_p5)  }
 0x3f2   : > { %v1184_v33 = vadd.f32 %v1182_v31, %v1181_v30  ;;  %v2207_v30 = vld [vmem:[%s2379_s14 + $0x20] sm:$0xff] (!%p1827_p5)   ;;  %v2208_v31 = vld [vmem:[%s2379_s14 + $0x28] sm:$0xff] (!%p1827_p5)  }
 0x3f4   : > { %v1185_v34 = vadd.f32 %v1184_v33, %v1183_v32  ;;  %v2209_v32 = vld [vmem:[%s2379_s14 + $0x30] sm:$0xff] (!%p1827_p5)   ;;  %v2210_v33 = vld [vmem:[%s2379_s14 + $0x38] sm:$0xff] (!%p1827_p5)  }
 0x3f6   : > { %v1186_v35 = vrot.slane %v1185_v34, 4 }
 0x3f8   : > { %v1187_v36 = vadd.f32 %v1186_v35, %v1185_v34 }
 0x3fa   : > { %v1188_v37 = vrot.slane %v1187_v36, 2 }
 0x3fc   : > { %v1189_v38 = vadd.f32 %v1188_v37, %v1187_v36 }
 0x3fe   : > { %v1190_v39 = vrot.slane %v1189_v38, 1 }
 0x400   : > { %v1191_v40 = vadd.f32 %v1190_v39, %v1189_v38 }
 0x402   : > { %v1192_v41 = vmul.f32 0.041666668, %v1191_v40 }
 0x404   : > { %v1193_v42 = vadd.f32 1e-05, %v1192_v41 }
 0x406   : > { %2188 = vrsqrt.f32 %v1193_v42 }
 0x410   : > { %v2189_v44 = vpop.eup %2188 }
 0x411   : > { %v1195_v45 = vmul.f32 %v2189_v44, %v1166_v43  ;;  %v1849_v44 = vld [vmem:[%s2389_s25 + $0x1] ss:$0 sm:$0xff] (!%p1827_p5) }
 0x413   : > { %v1196_v47 = vmul.f32 %v1195_v45, %v1177_v26  ;;  %v1201_v48 = vrot.slane %v1195_v45, %v2491_v49  ;;  %v2202_v26 = vld [vmem:[%s2614_s3 + $0x8] ss:$0 sps:$4 sm:$0xff] (!%p1827_p5)  }
 0x415   : > { %v1197_v50 = vsub.f32 %v1167_v46, %v1196_v47  ;;  %v1202_v51 = vmul.f32 %v1201_v48, %v1153_v15  ;;  %v1203_v52 = vmul.f32 %v1201_v48, %v1156_v16  ;;  %v1204_v53 = vmul.f32 %v1201_v48, %v1161_v17  ;;  %v1828_v15 = vld [vmem:[%s2389_s25] ss:$0 sm:$0xff] (!%p1827_p5) }
 0x417   : > { %v1208_v54 = vrot.slane %v1197_v50, %v2491_v49 }
 0x419   : > { %v1209_v55 = vadd.f32 %v1208_v54, %v1202_v51  ;;  %v1210_v56 = vadd.f32 %v1208_v54, %v1203_v52  ;;  %v1211_v57 = vadd.f32 %v1208_v54, %v1204_v53 }
 0x41a   : > { %1226 = sbr.rel (%p1827_p5) target bundleno = 1732 (0x6c4), region = 68 }
 0x41b   : > { %v1212_v58 = vmul.f32 0.01, %v1209_v55  ;;  %v1213_v59 = vmul.f32 0.01, %v1210_v56  ;;  %v1214_v60 = vmul.f32 0.01, %v1211_v57 }
 0x41d   : > { %v2510_v61 = vmax.f32 %v1209_v55, %v1212_v58  ;;  %v2512_v62 = vmax.f32 %v1210_v56, %v1213_v59  ;;  %v2514_v63 = vmax.f32 %v1211_v57, %v1214_v60 }
 0x41f   : > { %1220 = vst [vmem:[#allocation3] sm:$0xff] %v2510_v61  ;;  %1221 = vst [vmem:[#allocation3 + $0x8] sm:$0xff] %v2512_v62  ;;  %v1896_v12 = vpack.c.bf16 (!%p1827_p5), %v2512_v62, %v2510_v61  ;;  %v1877_v13 = vpack.c.bf16 (!%p1827_p5), %v2514_v63, %v2514_v63 }
 0x420   : > { %1222 = vst [vmem:[#allocation3 + $0x10] sm:$0xff] %v2514_v63 }
 0x421   : > { %1899 = vst [vmem:[#allocation4 + $0x8] sm:$0xff] %v1896_v12   ;;  %1365 = vst [vmem:[#allocation4 + $0x10] sm:$0xf] %v1877_v13 }
 0x428   : > { %v2199_v21 = vld [vmem:[#allocation4 + $0x8] sm:$0xff]   ;;  %v2200_v23 = vld [vmem:[#allocation4 + $0x10] ss:$0 sps:$4 sm:$0xff]  }
 0x429   : > { %v1404_v24 = vsel %vm618_vm1, %v2200_v23, 0 }
 0x4af   : > { %v1333_v16 = vpop.f32.mrb[0].mxu0 }
 0x4b0   : > { %v2086_v17 = vpop.f32.mrb[1].mxu0  ;;  %v1334_v8 = vadd.f32 %v1828_v15, %v1333_v16 }
 0x4b1   : > { %v1336_v11 = vpop.f32.mrb[2].mxu0 }
 0x4b2   : > { %v1337_v18 = vadd.f32 %v1828_v15, %v1336_v11  ;;  %v2087_v19 = vpop.f32.mrb[3].mxu0  ;;  %v1576_v15 = vld [vmem:[%s2389_s25 + $0x2] sm:$0x1]  ;;  %v1577_v11 = vld [vmem:[%s2389_s25 + $0x3] sm:$0x1] }
 0x4b4   : > { %v1891_v20 = vpack.c.bf16 %v1337_v18, %v1334_v8 }
 0x4b6   : > { %1892 = vst [vmem:[#allocation4] sm:$0xff] %v1891_v20  }
 0x4bd   : > { %v2198_v22 = vld [vmem:[#allocation4] sm:$0xff]  }
 0x4be   : > { %2088 = vmatprep.subr.bf16.mxu1 %v2198_v22 }
 0x4bf   : > { %2089 = vmatpush3.bf16.msra.mxu1 %v2198_v22 }
 0x4c0   : > { %2090 = vmatprep.subr.bf16.mxu1 %v2199_v21 }
 0x4c3   : > { %2091 = vmatpush3.bf16.msra.mxu1 %v2199_v21 }
 0x4c4   : > { %2119 = vmatprep.subr.msk.bf16.mxu1 %vm618_vm1, %v2200_v23 }
 0x4c7   : > { %2093 = vmatpush3.bf16.msra.mxu1 %v1404_v24 }
 0x4c8   : > { %2098 = vmatprep.subr.bf16.mxu1 %v2203_v25 }
 0x4ca   : > { %2095 = vmatmul.mubr.msk.bf16.vlgmr.msra.gmra.mrb[0].mxu1 %vm986_vm3, %v2202_v26 }
 0x4cb   : > { %2099 = vmatpush3.bf16.msra.mxu1 %v2203_v25 }
 0x4cc   : > { %2100 = vmatprep.subr.bf16.mxu1 %v2204_v27 }
 0x4cf   : > { %2101 = vmatpush3.bf16.msra.mxu1 %v2204_v27 }
 0x4d0   : > { %2102 = vmatprep.subr.bf16.mxu1 %v2205_v28 }
 0x4d3   : > { %2103 = vmatpush3.bf16.msra.mxu1 %v2205_v28 }
 0x4d4   : > { %2104 = vmatprep.subr.bf16.mxu1 %v2206_v29 }
 0x4d7   : > { %2105 = vmatpush3.bf16.msra.mxu1 %v2206_v29 }
 0x4d8   : > { %2106 = vmatprep.subr.bf16.mxu1 %v2207_v30 }
 0x4db   : > { %2107 = vmatpush3.bf16.msra.mxu1 %v2207_v30 }
 0x4dc   : > { %2108 = vmatprep.subr.bf16.mxu1 %v2208_v31 }
 0x4df   : > { %2109 = vmatpush3.bf16.msra.mxu1 %v2208_v31 }
 0x4e0   : > { %2110 = vmatprep.subr.bf16.mxu1 %v2209_v32 }
 0x4e3   : > { %2111 = vmatpush3.bf16.msra.mxu1 %v2209_v32 }
 0x4e4   : > { %2112 = vmatprep.subr.bf16.mxu1 %v2210_v33 }
 0x4e7   : > { %2113 = vmatpush3.bf16.msra.mxu1 %v2210_v33 }
 0x59d   : > { %v2096_v34 = vpop.f32.mrb[0].mxu1 }
 0x59e   : > { %v1440_v35 = vpop.f32.mrb[1].mxu1  ;;  %v1456_v37 = vadd.f32 %v2096_v34, %v2514_v63 }
 0x59f   : > { %v2097_v36 = vpop.f32.mrb[2].mxu1  ;;  %v1454_v39 = vadd.f32 %v1440_v35, %v2510_v61 }
 0x5a0   : > { %v1443_v38 = vpop.f32.mrb[3].mxu1  ;;  %v1458_v42 = vpack.c.bf16 %v1456_v37, %v1456_v37 }
 0x5a1   : > { %v1455_v40 = vadd.f32 %v1443_v38, %v2512_v62 }
 0x5a3   : > { %v1457_v41 = vpack.c.bf16 %v1455_v40, %v1454_v39 }
 0x5a5   : > { %2114 = vmatprep.mubr.bf16.mxu1 %v1457_v41 }
 0x5a6   : > { %2115 = vmatmul.mubr.bf16.vlgmr.msra.gmra.mrb[4].mxu1 %v1458_v42 }
 0x679   : > { %v2116_v43 = vpop.f32.mrb[4].mxu1 }
 0x67a   : > { %v1562_v45 = vpop.f32.mrb[5].mxu1  ;;  %v1571_v51 = vadd.f32 %v2116_v43, %v1849_v44 }
 0x67b   : > { %v2117_v46 = vpop.f32.mrb[6].mxu1  ;;  %v1563_v48 = vadd.f32 %v1849_v44, %v1562_v45 }
 0x67c   : > { %v1565_v47 = vpop.f32.mrb[7].mxu1 }
 0x67d   : > { %v1566_v50 = vadd.f32 %v1849_v44, %v1565_v47 }
 0x67f   : > { %v1578_v52 = vadd.f32 %v1566_v50, %v1563_v48 }
 0x681   : > { %v1579_v53 = vadd.f32 %v1578_v52, %v1571_v51 }
 0x683   : > { %v1580_v54 = vrot.slane %v1579_v53, 4 }
 0x685   : > { %v1581_v55 = vadd.f32 %v1580_v54, %v1579_v53 }
 0x687   : > { %v1582_v56 = vrot.slane %v1581_v55, 2 }
 0x689   : > { %v1583_v57 = vadd.f32 %v1582_v56, %v1581_v55 }
 0x68b   : > { %v1584_v58 = vrot.slane %v1583_v57, 1 }
 0x68d   : > { %v1585_v59 = vadd.f32 %v1584_v58, %v1583_v57 }
 0x68f   : > { %v1586_v60 = vmul.f32 0.041666668, %v1585_v59 }
 0x691   : > { %v1587_v61 = vsub.f32 %v1563_v48, %v1586_v60  ;;  %v1588_v62 = vsub.f32 %v1566_v50, %v1586_v60  ;;  %v1589_v63 = vsub.f32 %v1571_v51, %v1586_v60 }
 0x693   : > { %v1590_v0 = vmul.f32 %v1587_v61, %v1587_v61  ;;  %v1591_v1 = vmul.f32 %v1588_v62, %v1588_v62  ;;  %v1592_v2 = vmul.f32 %v1589_v63, %v1589_v63 }
 0x695   : > { %v1593_v3 = vadd.f32 %v1591_v1, %v1590_v0 }
 0x697   : > { %v1594_v4 = vadd.f32 %v1593_v3, %v1592_v2 }
 0x699   : > { %v1595_v5 = vrot.slane %v1594_v4, 4 }
 0x69b   : > { %v1596_v6 = vadd.f32 %v1595_v5, %v1594_v4 }
 0x69d   : > { %v1597_v7 = vrot.slane %v1596_v6, 2 }
 0x69f   : > { %v1598_v9 = vadd.f32 %v1597_v7, %v1596_v6 }
 0x6a1   : > { %v1599_v10 = vrot.slane %v1598_v9, 1 }
 0x6a3   : > { %v1600_v12 = vadd.f32 %v1599_v10, %v1598_v9 }
 0x6a5   : > { %v1601_v13 = vmul.f32 0.041666668, %v1600_v12 }
 0x6a7   : > { %v1602_v14 = vadd.f32 1e-05, %v1601_v13 }
 0x6a9   : > { %2211 = vrsqrt.f32 %v1602_v14 }
 0x6b3   : > { %v2212_v16 = vpop.eup %2211 }
 0x6b4   : > { %v1604_v17 = vmul.f32 %v2212_v16, %v1576_v15 }
 0x6b6   : > { %v1605_v8 = vmul.f32 %v1604_v17, %v1586_v60  ;;  %v1610_v18 = vrot.slane %v1604_v17, %v2491_v49 }
 0x6b8   : > { %v1606_v19 = vsub.f32 %v1577_v11, %v1605_v8  ;;  %v1611_v20 = vmul.f32 %v1610_v18, %v1563_v48  ;;  %v1612_v21 = vmul.f32 %v1610_v18, %v1566_v50  ;;  %v1613_v22 = vmul.f32 %v1610_v18, %v1571_v51 }
 0x6ba   : > { %v1617_v23 = vrot.slane %v1606_v19, %v2491_v49 }
 0x6bc   : > { %v1618_v24 = vadd.f32 %v1617_v23, %v1611_v20  ;;  %v1619_v25 = vadd.f32 %v1617_v23, %v1612_v21  ;;  %v1620_v26 = vadd.f32 %v1617_v23, %v1613_v22 }
 0x6be   : > { %v1621_v27 = vmul.f32 0.01, %v1618_v24  ;;  %v1622_v28 = vmul.f32 0.01, %v1619_v25  ;;  %v1623_v29 = vmul.f32 0.01, %v1620_v26 }
 0x6c0   : > { %v1624_v30 = vmax.f32 %v1618_v24, %v1621_v27  ;;  %v1625_v31 = vmax.f32 %v1619_v25, %v1622_v28  ;;  %v1626_v32 = vmax.f32 %v1620_v26, %v1623_v29 }
 0x6c2   : > { %1627 = vst [vmem:[#allocation7] sm:$0xff] %v1624_v30  ;;  %1628 = vst [vmem:[#allocation7 + $0x8] sm:$0xff] %v1625_v31 }
 0x6c3   : > { %1629 = vst [vmem:[#allocation7 + $0x10] sm:$0xff] %v1626_v32 }
 0x6c4 PF: > { %p2128_p6 = scmp.eq.s32.totalorder %s2355_s18, 1  ;;  %s2285_s14 = smov [#allocation5]  }
 0x6c5   : > { %s1636_s25 = sshll.u32 %s2285_s14, 4  ;;  %s1637_s25 = int_to_ptr.vmem [resolvable:$true] %s1636_s25 }
 0x6c6   : > { %s2213_s13 = scalar_lea.vmem %s1637_s25, 256  ;;  %p2220_p10 = scmp.lt.s32.totalorder %s1637_s25, %s1637_s25 }
 0x6c7   : > { %p2214_p7 = scmp.ne.s32.totalorder %s1637_s25, %s2213_s13  ;;  %p2221_p11 = scmp.lt.s32.totalorder %s2213_s13, %s2213_s13 }
 0x6c9   : > { %p2215_p8 = pnand %p2214_p7, %p2128_p6  ;;  %p2222_p12 = por %p2221_p11, %p2220_p10 }
 0x6cb   : > { %p2216_p9 = pneg %p2215_p8 }
 0x6cd   : > { %p2223_p13 = pnand %p2222_p12, %p2216_p9 }
 0x6cf   : > { %2226 = shalt.err (!%p2223_p13)
}
 0x6d0   : > { %s2227_s16 = scalar_lea.hbm %s2621_s10, 256 }
 0x6d1   : > { %p2228_p0 = scmp.ne.s32.totalorder %s2621_s10, %s2227_s16  ;;  %p2233_p3 = scmp.lt.u32.totalorder %s2227_s16, %s2621_s10 }
 0x6d3   : > { %p2229_p1 = pnand %p2228_p0, %p2128_p6 }
 0x6d5   : > { %p2230_p2 = pneg %p2229_p1 }
 0x6d7   : > { %p2235_p4 = pnand %p2233_p3, %p2230_p2 }
 0x6d9   : > { %2238 = shalt.err (!%p2235_p4)
}
 0x6da   : > { %s2286_s28 = smov 128   ;;  %s2287_s27 = smov 8  }
 0x6db   : > { %2121 = dma.vmem_to_hbm [thread:$0]  (%p2128_p6), %s1637_s25, 256, %s2621_s10, [#allocation6], %s2286_s28, %s2286_s28, %s2287_s27  }
 0x6dc   : > { %s2288_s20 = smov [#allocation7]  }
 0x6dd   : > { %s1649_s30 = sshll.u32 %s2288_s20, 4  ;;  %s1650_s30 = int_to_ptr.vmem [resolvable:$true] %s1649_s30 }
 0x6de   : > { %s2239_s12 = scalar_lea.vmem %s1650_s30, 384  ;;  %p2246_p9 = scmp.lt.s32.totalorder %s1650_s30, %s1650_s30 }
 0x6df   : > { %p2240_p5 = scmp.ne.s32.totalorder %s1650_s30, %s2239_s12  ;;  %p2247_p10 = scmp.lt.s32.totalorder %s2239_s12, %s2239_s12 }
 0x6e1   : > { %p2241_p7 = pnand %p2240_p5, %p2128_p6  ;;  %p2248_p11 = por %p2247_p10, %p2246_p9 }
 0x6e3   : > { %p2242_p8 = pneg %p2241_p7 }
 0x6e5   : > { %p2249_p12 = pnand %p2248_p11, %p2242_p8 }
 0x6e7   : > { %2252 = shalt.err (!%p2249_p12)
}
 0x6e8   : > { %s2253_s21 = scalar_lea.hbm %s2622_s11, 384 }
 0x6e9   : > { %p2254_p13 = scmp.ne.s32.totalorder %s2622_s11, %s2253_s21  ;;  %p2259_p2 = scmp.lt.u32.totalorder %s2253_s21, %s2622_s11 }
 0x6eb   : > { %p2255_p0 = pnand %p2254_p13, %p2128_p6 }
 0x6ed   : > { %p2256_p1 = pneg %p2255_p0 }
 0x6ef   : > { %p2261_p3 = pnand %p2259_p2, %p2256_p1 }
 0x6f1   : > { %2264 = shalt.err (!%p2261_p3)
}
 0x6f2   : > { %2123 = dma.vmem_to_hbm [thread:$0]  (%p2128_p6), %s1650_s30, 384, %s2622_s11, [#allocation8], %s2286_s28, %s2286_s28, %s2287_s27  }
 0x6f3   : > { %2270 = dma.done.wait (%p2128_p6), [#allocation6], 256  }
 0x6f4   : > { %2272 = vsyncadd (%p2128_p6), [#allocation6], 4294967040 }
 0x6f5   : > { %2274 = dma.done.wait (%p2128_p6), [#allocation8], 384  }
 0x6f6   : > { %2276 = vsyncadd (%p2128_p6), [#allocation8], 4294966912 }
 0x6f7 PF: > { %s24_s17 = sadd.s32 1, %s2279_s17  }
 0x6f8   : > { %p21_p4 = scmp.ge.s32.totalorder %s24_s17, 4  }
 0x6fa   :  { %23 = sbr.rel (!%p21_p4) target bundleno = 2 (0x2), region = 118 }
 0x701   :  { %1669 = vsyncpa [#allocation6], 1 }
 0x702   :  { %1671 = vsyncpa [#allocation6 + $0x1], 1 }
 0x703   :  { %1672 = vsyncpa [#allocation8], 1 }

</bundles_post_ra>
